<compile_context>
chip_gen: v7x
topology: tpu7x:2x2x1
jax: 0.10.0
libtpu: 0.0.40
codegen_flags: <defaults>
</compile_context>

<pallas_src>
import jax
import jax.numpy as jnp
import numpy as np
from jax.experimental import pallas as pl
from jax.experimental.pallas import tpu as pltpu


# ---------------------------------------------------------------------------
# Kernel
# ---------------------------------------------------------------------------
def decoder_kernel(ids_ref,                         # (B,1) int32 token ids (VMEM)
                   hid_ref, enc_ref, emb_ref,       # (B,H) (B,S,E2) (Vp,E)
                   awh_ref, awe_ref, ab_ref, av_ref,        # (H,H) (E2,H) (1,H) (1,H)
                   wier_ref, wiez_ref, wien_ref,            # (E,H) x3   (embedded -> gates)
                   wiwr_ref, wiwz_ref, wiwn_ref,            # (E2,H) x3  (weighted -> gates)
                   whr_ref, whz_ref, whn_ref,               # (H,H) x3   (hidden -> gates)
                   br_ref, bz_ref, bin_ref, bhn_ref,        # (1,H) x4
                   fch_ref, fcwt_ref, fce_ref, fcb_ref,     # (H,Vp) (E2,Vp) (E,Vp) (1,Vp)
                   pred_ref, hnew_ref):                     # outputs (B,Vp) (B,H)
    h = hid_ref[...]                                # (B, H)
    enc = enc_ref[...]                              # (B, S, E2)
    B, S, E2 = enc.shape
    H = h.shape[1]
    Vp = emb_ref.shape[0]

    def mm(a, b):
        return jnp.dot(a, b, preferred_element_type=jnp.float32)

    # --- embedding lookup as a one-hot matmul (dropout = identity at inference) ---
    ids = ids_ref[...]                              # (B, 1) int32
    onehot = (jax.lax.broadcasted_iota(jnp.int32, (B, Vp), 1) == ids).astype(jnp.float32)
    embedded = mm(onehot, emb_ref[...])             # (B, E)

    # --- Bahdanau ("concat") attention, without broadcast/concat ------------------
    # energy = tanh(enc @ W_e + (h @ W_h)[:,None,:] + b);  score = energy . v
    h_proj = mm(h, awh_ref[...])                    # (B, H)
    e_proj = mm(enc.reshape(B * S, E2), awe_ref[...]).reshape(B, S, H)
    energy = jnp.tanh(e_proj + h_proj[:, None, :] + ab_ref[...])        # (B, S, H)
    scores = jnp.sum(energy * av_ref[...].reshape(1, 1, H), axis=2)     # (B, S)
    scores = scores - jnp.max(scores, axis=1, keepdims=True)
    ex = jnp.exp(scores)
    a = ex * pl.reciprocal(jnp.sum(ex, axis=1, keepdims=True), approx=True)

    # weighted context = bmm(a, enc)  -> (B, E2)
    weighted = jnp.sum(a[:, :, None] * enc, axis=1)

    # --- single GRU step: per-gate split-weight partial products ------------------
    r = jax.nn.sigmoid(mm(embedded, wier_ref[...]) + mm(weighted, wiwr_ref[...])
                       + mm(h, whr_ref[...]) + br_ref[...])
    z = jax.nn.sigmoid(mm(embedded, wiez_ref[...]) + mm(weighted, wiwz_ref[...])
                       + mm(h, whz_ref[...]) + bz_ref[...])
    gh_n = mm(h, whn_ref[...]) + bhn_ref[...]
    gi_n = mm(embedded, wien_ref[...]) + mm(weighted, wiwn_ref[...]) + bin_ref[...]
    n = jnp.tanh(gi_n + r * gh_n)
    h_new = (1.0 - z) * n + z * h                    # == GRU output (single step)

    # --- output projection fc_out([output ; weighted ; embedded]), lane-dense -----
    pred = (mm(h_new, fch_ref[...]) + mm(weighted, fcwt_ref[...])
            + mm(embedded, fce_ref[...]) + fcb_ref[...])

    pred_ref[...] = pred.astype(pred_ref.dtype)
    hnew_ref[...] = h_new.astype(hnew_ref.dtype)


# ---------------------------------------------------------------------------
# Parameter preparation (done ONCE, outside the per-step forward)
# ---------------------------------------------------------------------------
def prepare_params(params):
    """Split / pad the PyTorch-style parameters for the kernel."""
    H = params["w_hh"].shape[0]
    EMB = params["emb"].shape[1]
    E2 = params["attn_w"].shape[0] - H
    V = params["emb"].shape[0]
    Vp = pl.cdiv(V, 128) * 128                      # lane-dense vocab padding

    w_ih, w_hh = params["w_ih"], params["w_hh"]
    b_ih, b_hh = params["b_ih"], params["b_hh"]
    fc_w = params["fc_w"]

    def padv(x):                                    # pad last dim V -> Vp
        return jnp.pad(x, ((0, 0), (0, Vp - V)))

    prepped = dict(
        emb=jnp.pad(params["emb"], ((0, Vp - V), (0, 0))),
        attn_w_h=params["attn_w"][:H], attn_w_e=params["attn_w"][H:],
        attn_b=params["attn_b"], attn_v=params["attn_v"],
        # GRU input-hidden weights, split by input section (embedded / weighted) and gate
        w_ie_r=w_ih[:EMB, 0:H], w_ie_z=w_ih[:EMB, H:2 * H], w_ie_n=w_ih[:EMB, 2 * H:],
        w_iw_r=w_ih[EMB:, 0:H], w_iw_z=w_ih[EMB:, H:2 * H], w_iw_n=w_ih[EMB:, 2 * H:],
        # GRU hidden-hidden weights per gate
        w_h_r=w_hh[:, 0:H], w_h_z=w_hh[:, H:2 * H], w_h_n=w_hh[:, 2 * H:],
        # biases: r/z biases can be pre-summed, n biases must stay separate (r * (Wh h + b_hn))
        b_r=b_ih[:, 0:H] + b_hh[:, 0:H],
        b_z=b_ih[:, H:2 * H] + b_hh[:, H:2 * H],
        b_in=b_ih[:, 2 * H:], b_hn=b_hh[:, 2 * H:],
        # fc_out split by feature section, vocab-padded
        fc_h=padv(fc_w[:H]), fc_wt=padv(fc_w[H:H + E2]), fc_e=padv(fc_w[H + E2:]),
        fc_b=padv(params["fc_b"]),
    )
    return prepped, V, Vp


# ---------------------------------------------------------------------------
# Wrapper
# ---------------------------------------------------------------------------
def decoder_forward(token_ids, hidden, encoder_outputs, prepped, V):
    """token_ids: (B,) int32; hidden: (B,H); encoder_outputs: (S,B,E2) (PyTorch layout)."""
    enc_bse = jnp.transpose(encoder_outputs, (1, 0, 2))       # -> (B, S, E2)
    B, S, E2 = enc_bse.shape
    H = hidden.shape[1]
    Vp = prepped["emb"].shape[0]

    # Pad batch to a multiple of 8 (full f32 sublanes).
    Bp = pl.cdiv(B, 8) * 8
    pad_b = Bp - B
    ids = token_ids.astype(jnp.int32).reshape(B, 1)
    if pad_b:
        ids = jnp.pad(ids, ((0, pad_b), (0, 0)))
        hidden_p = jnp.pad(hidden, ((0, pad_b), (0, 0)))
        enc_p = jnp.pad(enc_bse, ((0, pad_b), (0, 0), (0, 0)))
    else:
        hidden_p, enc_p = hidden, enc_bse

    in_arrays = (
        ids, hidden_p, enc_p, prepped["emb"],
        prepped["attn_w_h"], prepped["attn_w_e"], prepped["attn_b"], prepped["attn_v"],
        prepped["w_ie_r"], prepped["w_ie_z"], prepped["w_ie_n"],
        prepped["w_iw_r"], prepped["w_iw_z"], prepped["w_iw_n"],
        prepped["w_h_r"], prepped["w_h_z"], prepped["w_h_n"],
        prepped["b_r"], prepped["b_z"], prepped["b_in"], prepped["b_hn"],
        prepped["fc_h"], prepped["fc_wt"], prepped["fc_e"], prepped["fc_b"],
    )

    def full(shape):
        return pl.BlockSpec(shape, lambda i, _n=len(shape): (0,) * _n)

    grid_spec = pltpu.PrefetchScalarGridSpec(
        num_scalar_prefetch=0,
        grid=(1,),
        in_specs=[full(a.shape) for a in in_arrays],
        out_specs=(full((Bp, Vp)), full((Bp, H))),
    )

    pred, h_new = pl.pallas_call(
        decoder_kernel,
        out_shape=(jax.ShapeDtypeStruct((Bp, Vp), jnp.float32),
                   jax.ShapeDtypeStruct((Bp, H), jnp.float32)),
        grid_spec=grid_spec,
        compiler_params=pltpu.CompilerParams(dimension_semantics=("arbitrary",)),
    )(*in_arrays)

    return pred[:B, :V], h_new[:B]


# ---------------------------------------------------------------------------
# Pure-JAX reference (original unsplit parameterization, same math/gate order)
# ---------------------------------------------------------------------------
def decoder_reference(token_ids, hidden, encoder_outputs, params):
    hi = jax.lax.Precision.HIGHEST
    enc = jnp.transpose(encoder_outputs, (1, 0, 2))
    B, S, _ = enc.shape
    H = hidden.shape[1]
    embedded = params["emb"][token_ids]
    h_rep = jnp.broadcast_to(hidden[:, None, :], (B, S, H))
    cat = jnp.concatenate([h_rep, enc], axis=2)
    energy = jnp.tanh(jnp.dot(cat, params["attn_w"], precision=hi) + params["attn_b"])
    scores = jnp.sum(energy * params["attn_v"].reshape(1, 1, H), axis=2)
    a = jax.nn.softmax(scores, axis=1)
    weighted = jnp.einsum("bs,bse->be", a, enc, precision=hi)
    x = jnp.concatenate([embedded, weighted], axis=1)
    gi = jnp.dot(x, params["w_ih"], precision=hi) + params["b_ih"]
    gh = jnp.dot(hidden, params["w_hh"], precision=hi) + params["b_hh"]
    r = jax.nn.sigmoid(gi[:, :H] + gh[:, :H])
    z = jax.nn.sigmoid(gi[:, H:2 * H] + gh[:, H:2 * H])
    n = jnp.tanh(gi[:, 2 * H:] + r * gh[:, 2 * H:])
    h_new = (1.0 - z) * n + z * hidden
    feat = jnp.concatenate([h_new, weighted, embedded], axis=1)
    pred = jnp.dot(feat, params["fc_w"], precision=hi) + params["fc_b"]
    return pred, h_new


# ---------------------------------------------------------------------------
# Main
# ---------------------------------------------------------------------------
if __name__ == "__main__":
    # Small shapes consistent with the module's forward (batch raised to 8 so f32
    # vregs get full sublane utilization).
    B = 8            # batch size
    S = 8            # src_len
    EMB = 32         # emb_dim
    ENC = 16         # enc_hid_dim (encoder is bidirectional -> E2 = 2*ENC)
    E2 = 2 * ENC
    H = 32           # dec_hid_dim
    V = 64           # output_dim (vocab)

    key = jax.random.PRNGKey(0)
    ks = jax.random.split(key, 16)
    sc = 0.1

    params = {
        "emb":    sc * jax.random.normal(ks[0], (V, EMB), jnp.float32),
        # Attention: Linear(E2 + H, H) + v: Linear(H, 1, bias=False)
        "attn_w": sc * jax.random.normal(ks[1], (H + E2, H), jnp.float32),
        "attn_b": sc * jax.random.normal(ks[2], (1, H), jnp.float32),
        "attn_v": sc * jax.random.normal(ks[3], (1, H), jnp.float32),
        # GRU(E2 + EMB, H): gate order [r | z | n] along the 3H axis (weights stored transposed)
        "w_ih":   sc * jax.random.normal(ks[4], (EMB + E2, 3 * H), jnp.float32),
        "w_hh":   sc * jax.random.normal(ks[5], (H, 3 * H), jnp.float32),
        "b_ih":   sc * jax.random.normal(ks[6], (1, 3 * H), jnp.float32),
        "b_hh":   sc * jax.random.normal(ks[7], (1, 3 * H), jnp.float32),
        # fc_out(E2 + H + EMB, V)
        "fc_w":   sc * jax.random.normal(ks[8], (H + E2 + EMB, V), jnp.float32),
        "fc_b":   sc * jax.random.normal(ks[9], (1, V), jnp.float32),
    }

    token_ids = jax.random.randint(ks[10], (B,), 0, V, dtype=jnp.int32)     # input
    hidden = jax.random.normal(ks[11], (B, H), jnp.float32)                 # hidden
    encoder_outputs = jax.random.normal(ks[12], (S, B, E2), jnp.float32)    # [src_len, batch, enc_hid*2]

    prepped, V_out, Vp = prepare_params(params)      # split/pad weights once

    pred, h_new = decoder_forward(token_ids, hidden, encoder_outputs, prepped, V_out)
    pred, h_new = jax.block_until_ready((pred, h_new))

    ref_pred, ref_h = decoder_reference(token_ids, hidden, encoder_outputs, params)
    assert pred.shape == (B, V) and h_new.shape == (B, H)
    np.testing.assert_allclose(np.asarray(pred), np.asarray(ref_pred), rtol=2e-3, atol=2e-3)
    np.testing.assert_allclose(np.asarray(h_new), np.asarray(ref_h), rtol=2e-3, atol=2e-3)

    print("KERNEL_OK")
</pallas_src>

<mosaic_0001>
module attributes {stable_mosaic.version = 11 : i64} {
  func.func @decoder_kernel(%arg0: i32, %arg1: memref<8x1xi32, #tpu.memory_space<vmem>>, %arg2: memref<8x32xf32, #tpu.memory_space<vmem>>, %arg3: memref<8x8x32xf32, #tpu.memory_space<vmem>>, %arg4: memref<128x32xf32, #tpu.memory_space<vmem>>, %arg5: memref<32x32xf32, #tpu.memory_space<vmem>>, %arg6: memref<32x32xf32, #tpu.memory_space<vmem>>, %arg7: memref<1x32xf32, #tpu.memory_space<vmem>>, %arg8: memref<1x32xf32, #tpu.memory_space<vmem>>, %arg9: memref<32x32xf32, #tpu.memory_space<vmem>>, %arg10: memref<32x32xf32, #tpu.memory_space<vmem>>, %arg11: memref<32x32xf32, #tpu.memory_space<vmem>>, %arg12: memref<32x32xf32, #tpu.memory_space<vmem>>, %arg13: memref<32x32xf32, #tpu.memory_space<vmem>>, %arg14: memref<32x32xf32, #tpu.memory_space<vmem>>, %arg15: memref<32x32xf32, #tpu.memory_space<vmem>>, %arg16: memref<32x32xf32, #tpu.memory_space<vmem>>, %arg17: memref<32x32xf32, #tpu.memory_space<vmem>>, %arg18: memref<1x32xf32, #tpu.memory_space<vmem>>, %arg19: memref<1x32xf32, #tpu.memory_space<vmem>>, %arg20: memref<1x32xf32, #tpu.memory_space<vmem>>, %arg21: memref<1x32xf32, #tpu.memory_space<vmem>>, %arg22: memref<32x128xf32, #tpu.memory_space<vmem>>, %arg23: memref<32x128xf32, #tpu.memory_space<vmem>>, %arg24: memref<32x128xf32, #tpu.memory_space<vmem>>, %arg25: memref<1x128xf32, #tpu.memory_space<vmem>>, %arg26: memref<8x128xf32, #tpu.memory_space<vmem>>, %arg27: memref<8x32xf32, #tpu.memory_space<vmem>>) attributes {dimension_semantics = [#tpu.dimension_semantics<arbitrary>], iteration_bounds = array<i64: 1>, scalar_prefetch = 0 : i64, scratch_operands = 0 : i64, tpu.core_type = #tpu.core_type<tc>, window_params = [{pipeline_mode = #tpu.pipeline_mode<synchronous>, transform_indices = @transform_0, window_bounds = array<i64: 8, 1>}, {pipeline_mode = #tpu.pipeline_mode<synchronous>, transform_indices = @transform_1, window_bounds = array<i64: 8, 32>}, {pipeline_mode = #tpu.pipeline_mode<synchronous>, transform_indices = @transform_2, window_bounds = array<i64: 8, 8, 32>}, {pipeline_mode = #tpu.pipeline_mode<synchronous>, transform_indices = @transform_3, window_bounds = array<i64: 128, 32>}, {pipeline_mode = #tpu.pipeline_mode<synchronous>, transform_indices = @transform_4, window_bounds = array<i64: 32, 32>}, {pipeline_mode = #tpu.pipeline_mode<synchronous>, transform_indices = @transform_5, window_bounds = array<i64: 32, 32>}, {pipeline_mode = #tpu.pipeline_mode<synchronous>, transform_indices = @transform_6, window_bounds = array<i64: 1, 32>}, {pipeline_mode = #tpu.pipeline_mode<synchronous>, transform_indices = @transform_7, window_bounds = array<i64: 1, 32>}, {pipeline_mode = #tpu.pipeline_mode<synchronous>, transform_indices = @transform_8, window_bounds = array<i64: 32, 32>}, {pipeline_mode = #tpu.pipeline_mode<synchronous>, transform_indices = @transform_9, window_bounds = array<i64: 32, 32>}, {pipeline_mode = #tpu.pipeline_mode<synchronous>, transform_indices = @transform_10, window_bounds = array<i64: 32, 32>}, {pipeline_mode = #tpu.pipeline_mode<synchronous>, transform_indices = @transform_11, window_bounds = array<i64: 32, 32>}, {pipeline_mode = #tpu.pipeline_mode<synchronous>, transform_indices = @transform_12, window_bounds = array<i64: 32, 32>}, {pipeline_mode = #tpu.pipeline_mode<synchronous>, transform_indices = @transform_13, window_bounds = array<i64: 32, 32>}, {pipeline_mode = #tpu.pipeline_mode<synchronous>, transform_indices = @transform_14, window_bounds = array<i64: 32, 32>}, {pipeline_mode = #tpu.pipeline_mode<synchronous>, transform_indices = @transform_15, window_bounds = array<i64: 32, 32>}, {pipeline_mode = #tpu.pipeline_mode<synchronous>, transform_indices = @transform_16, window_bounds = array<i64: 32, 32>}, {pipeline_mode = #tpu.pipeline_mode<synchronous>, transform_indices = @transform_17, window_bounds = array<i64: 1, 32>}, {pipeline_mode = #tpu.pipeline_mode<synchronous>, transform_indices = @transform_18, window_bounds = array<i64: 1, 32>}, {pipeline_mode = #tpu.pipeline_mode<synchronous>, transform_indices = @transform_19, window_bounds = array<i64: 1, 32>}, {pipeline_mode = #tpu.pipeline_mode<synchronous>, transform_indices = @transform_20, window_bounds = array<i64: 1, 32>}, {pipeline_mode = #tpu.pipeline_mode<synchronous>, transform_indices = @transform_21, window_bounds = array<i64: 32, 128>}, {pipeline_mode = #tpu.pipeline_mode<synchronous>, transform_indices = @transform_22, window_bounds = array<i64: 32, 128>}, {pipeline_mode = #tpu.pipeline_mode<synchronous>, transform_indices = @transform_23, window_bounds = array<i64: 32, 128>}, {pipeline_mode = #tpu.pipeline_mode<synchronous>, transform_indices = @transform_24, window_bounds = array<i64: 1, 128>}, {pipeline_mode = #tpu.pipeline_mode<synchronous>, transform_indices = @transform_25, window_bounds = array<i64: 8, 128>}, {pipeline_mode = #tpu.pipeline_mode<synchronous>, transform_indices = @transform_26, window_bounds = array<i64: 8, 32>}]} {
    %c0 = arith.constant 0 : index
    %c0_0 = arith.constant 0 : index
    %0 = vector.load %arg2[%c0, %c0_0] : memref<8x32xf32, #tpu.memory_space<vmem>>, vector<8x32xf32>
    %c0_1 = arith.constant 0 : index
    %c0_2 = arith.constant 0 : index
    %c0_3 = arith.constant 0 : index
    %1 = vector.load %arg3[%c0_1, %c0_2, %c0_3] : memref<8x8x32xf32, #tpu.memory_space<vmem>>, vector<8x8x32xf32>
    %c0_4 = arith.constant 0 : index
    %c0_5 = arith.constant 0 : index
    %2 = vector.load %arg1[%c0_4, %c0_5] : memref<8x1xi32, #tpu.memory_space<vmem>>, vector<8x1xi32>
    %3 = tpu.iota {dimensions = array<i32: 1>} : vector<8x128xi32>
    %4 = vector.broadcast %2 : vector<8x1xi32> to vector<8x128xi32>
    %5 = arith.cmpi eq, %3, %4 : vector<8x128xi32>
    %6 = arith.extui %5 : vector<8x128xi1> to vector<8x128xi32>
    %7 = arith.sitofp %6 : vector<8x128xi32> to vector<8x128xf32>
    %c0_6 = arith.constant 0 : index
    %c0_7 = arith.constant 0 : index
    %8 = vector.load %arg4[%c0_6, %c0_7] : memref<128x32xf32, #tpu.memory_space<vmem>>, vector<128x32xf32>
    %cst = arith.constant dense<0.000000e+00> : vector<8x32xf32>
    %9 = tpu.matmul %7, %8, %cst {dimension_numbers = #tpu.dot_dimension_numbers<[1], [0], [0], [1], [0, 0, 1, 1], [], []>} : vector<8x128xf32>, vector<128x32xf32>, vector<8x32xf32> -> vector<8x32xf32>
    %c0_8 = arith.constant 0 : index
    %c0_9 = arith.constant 0 : index
    %10 = vector.load %arg5[%c0_8, %c0_9] : memref<32x32xf32, #tpu.memory_space<vmem>>, vector<32x32xf32>
    %cst_10 = arith.constant dense<0.000000e+00> : vector<8x32xf32>
    %11 = tpu.matmul %0, %10, %cst_10 {dimension_numbers = #tpu.dot_dimension_numbers<[1], [0], [0], [1], [0, 0, 1, 1], [], []>} : vector<8x32xf32>, vector<32x32xf32>, vector<8x32xf32> -> vector<8x32xf32>
    %12 = vector.shape_cast %1 : vector<8x8x32xf32> to vector<64x32xf32>
    %c0_11 = arith.constant 0 : index
    %c0_12 = arith.constant 0 : index
    %13 = vector.load %arg6[%c0_11, %c0_12] : memref<32x32xf32, #tpu.memory_space<vmem>>, vector<32x32xf32>
    %cst_13 = arith.constant dense<0.000000e+00> : vector<64x32xf32>
    %14 = tpu.matmul %12, %13, %cst_13 {dimension_numbers = #tpu.dot_dimension_numbers<[1], [0], [0], [1], [0, 0, 1, 1], [], []>} : vector<64x32xf32>, vector<32x32xf32>, vector<64x32xf32> -> vector<64x32xf32>
    %15 = vector.shape_cast %14 : vector<64x32xf32> to vector<8x8x32xf32>
    %16 = vector.shape_cast %11 : vector<8x32xf32> to vector<8x1x32xf32>
    %17 = vector.broadcast %16 : vector<8x1x32xf32> to vector<8x8x32xf32>
    %18 = arith.addf %15, %17 : vector<8x8x32xf32>
    %c0_14 = arith.constant 0 : index
    %c0_15 = arith.constant 0 : index
    %19 = vector.load %arg7[%c0_14, %c0_15] : memref<1x32xf32, #tpu.memory_space<vmem>>, vector<1x32xf32>
    %20 = vector.shape_cast %19 : vector<1x32xf32> to vector<1x1x32xf32>
    %21 = vector.broadcast %20 : vector<1x1x32xf32> to vector<8x8x32xf32>
    %22 = arith.addf %18, %21 : vector<8x8x32xf32>
    %23 = math.tanh %22 : vector<8x8x32xf32>
    %c0_16 = arith.constant 0 : index
    %c0_17 = arith.constant 0 : index
    %24 = vector.load %arg8[%c0_16, %c0_17] : memref<1x32xf32, #tpu.memory_space<vmem>>, vector<1x32xf32>
    %25 = vector.shape_cast %24 : vector<1x32xf32> to vector<1x1x32xf32>
    %26 = vector.broadcast %25 : vector<1x1x32xf32> to vector<8x8x32xf32>
    %27 = arith.mulf %23, %26 : vector<8x8x32xf32>
    %cst_18 = arith.constant dense<0.000000e+00> : vector<8x8xf32>
    %28 = vector.multi_reduction <add>, %27, %cst_18 [2] : vector<8x8x32xf32> to vector<8x8xf32>
    %cst_19 = arith.constant dense<0xFF800000> : vector<8xf32>
    %29 = vector.multi_reduction <maximumf>, %28, %cst_19 [1] : vector<8x8xf32> to vector<8xf32>
    %30 = vector.shape_cast %29 : vector<8xf32> to vector<8x1xf32>
    %31 = vector.broadcast %30 : vector<8x1xf32> to vector<8x8xf32>
    %32 = arith.subf %28, %31 : vector<8x8xf32>
    %33 = math.exp %32 : vector<8x8xf32>
    %cst_20 = arith.constant dense<0.000000e+00> : vector<8xf32>
    %34 = vector.multi_reduction <add>, %33, %cst_20 [1] : vector<8x8xf32> to vector<8xf32>
    %35 = vector.shape_cast %34 : vector<8xf32> to vector<8x1xf32>
    %36 = tpu.reciprocal %35 {approx = true} : vector<8x1xf32> -> vector<8x1xf32>
    %37 = vector.broadcast %36 : vector<8x1xf32> to vector<8x8xf32>
    %38 = arith.mulf %33, %37 : vector<8x8xf32>
    %39 = vector.shape_cast %38 : vector<8x8xf32> to vector<8x8x1xf32>
    %40 = vector.broadcast %39 : vector<8x8x1xf32> to vector<8x8x32xf32>
    %41 = arith.mulf %40, %1 : vector<8x8x32xf32>
    %cst_21 = arith.constant dense<0.000000e+00> : vector<8x32xf32>
    %42 = vector.multi_reduction <add>, %41, %cst_21 [1] : vector<8x8x32xf32> to vector<8x32xf32>
    %c0_22 = arith.constant 0 : index
    %c0_23 = arith.constant 0 : index
    %43 = vector.load %arg9[%c0_22, %c0_23] : memref<32x32xf32, #tpu.memory_space<vmem>>, vector<32x32xf32>
    %cst_24 = arith.constant dense<0.000000e+00> : vector<8x32xf32>
    %44 = tpu.matmul %9, %43, %cst_24 {dimension_numbers = #tpu.dot_dimension_numbers<[1], [0], [0], [1], [0, 0, 1, 1], [], []>} : vector<8x32xf32>, vector<32x32xf32>, vector<8x32xf32> -> vector<8x32xf32>
    %c0_25 = arith.constant 0 : index
    %c0_26 = arith.constant 0 : index
    %45 = vector.load %arg12[%c0_25, %c0_26] : memref<32x32xf32, #tpu.memory_space<vmem>>, vector<32x32xf32>
    %cst_27 = arith.constant dense<0.000000e+00> : vector<8x32xf32>
    %46 = tpu.matmul %42, %45, %cst_27 {dimension_numbers = #tpu.dot_dimension_numbers<[1], [0], [0], [1], [0, 0, 1, 1], [], []>} : vector<8x32xf32>, vector<32x32xf32>, vector<8x32xf32> -> vector<8x32xf32>
    %47 = arith.addf %44, %46 : vector<8x32xf32>
    %c0_28 = arith.constant 0 : index
    %c0_29 = arith.constant 0 : index
    %48 = vector.load %arg15[%c0_28, %c0_29] : memref<32x32xf32, #tpu.memory_space<vmem>>, vector<32x32xf32>
    %cst_30 = arith.constant dense<0.000000e+00> : vector<8x32xf32>
    %49 = tpu.matmul %0, %48, %cst_30 {dimension_numbers = #tpu.dot_dimension_numbers<[1], [0], [0], [1], [0, 0, 1, 1], [], []>} : vector<8x32xf32>, vector<32x32xf32>, vector<8x32xf32> -> vector<8x32xf32>
    %50 = arith.addf %47, %49 : vector<8x32xf32>
    %c0_31 = arith.constant 0 : index
    %c0_32 = arith.constant 0 : index
    %51 = vector.load %arg18[%c0_31, %c0_32] : memref<1x32xf32, #tpu.memory_space<vmem>>, vector<1x32xf32>
    %52 = vector.broadcast %51 : vector<1x32xf32> to vector<8x32xf32>
    %53 = arith.addf %50, %52 : vector<8x32xf32>
    %54 = arith.negf %53 : vector<8x32xf32>
    %55 = math.exp %54 : vector<8x32xf32>
    %cst_33 = arith.constant 1.000000e+00 : f32
    %56 = vector.broadcast %cst_33 : f32 to vector<8x32xf32>
    %57 = arith.addf %56, %55 : vector<8x32xf32>
    %58 = arith.divf %56, %57 : vector<8x32xf32>
    %c0_34 = arith.constant 0 : index
    %c0_35 = arith.constant 0 : index
    %59 = vector.load %arg10[%c0_34, %c0_35] : memref<32x32xf32, #tpu.memory_space<vmem>>, vector<32x32xf32>
    %cst_36 = arith.constant dense<0.000000e+00> : vector<8x32xf32>
    %60 = tpu.matmul %9, %59, %cst_36 {dimension_numbers = #tpu.dot_dimension_numbers<[1], [0], [0], [1], [0, 0, 1, 1], [], []>} : vector<8x32xf32>, vector<32x32xf32>, vector<8x32xf32> -> vector<8x32xf32>
    %c0_37 = arith.constant 0 : index
    %c0_38 = arith.constant 0 : index
    %61 = vector.load %arg13[%c0_37, %c0_38] : memref<32x32xf32, #tpu.memory_space<vmem>>, vector<32x32xf32>
    %cst_39 = arith.constant dense<0.000000e+00> : vector<8x32xf32>
    %62 = tpu.matmul %42, %61, %cst_39 {dimension_numbers = #tpu.dot_dimension_numbers<[1], [0], [0], [1], [0, 0, 1, 1], [], []>} : vector<8x32xf32>, vector<32x32xf32>, vector<8x32xf32> -> vector<8x32xf32>
    %63 = arith.addf %60, %62 : vector<8x32xf32>
    %c0_40 = arith.constant 0 : index
    %c0_41 = arith.constant 0 : index
    %64 = vector.load %arg16[%c0_40, %c0_41] : memref<32x32xf32, #tpu.memory_space<vmem>>, vector<32x32xf32>
    %cst_42 = arith.constant dense<0.000000e+00> : vector<8x32xf32>
    %65 = tpu.matmul %0, %64, %cst_42 {dimension_numbers = #tpu.dot_dimension_numbers<[1], [0], [0], [1], [0, 0, 1, 1], [], []>} : vector<8x32xf32>, vector<32x32xf32>, vector<8x32xf32> -> vector<8x32xf32>
    %66 = arith.addf %63, %65 : vector<8x32xf32>
    %c0_43 = arith.constant 0 : index
    %c0_44 = arith.constant 0 : index
    %67 = vector.load %arg19[%c0_43, %c0_44] : memref<1x32xf32, #tpu.memory_space<vmem>>, vector<1x32xf32>
    %68 = vector.broadcast %67 : vector<1x32xf32> to vector<8x32xf32>
    %69 = arith.addf %66, %68 : vector<8x32xf32>
    %70 = arith.negf %69 : vector<8x32xf32>
    %71 = math.exp %70 : vector<8x32xf32>
    %cst_45 = arith.constant 1.000000e+00 : f32
    %72 = vector.broadcast %cst_45 : f32 to vector<8x32xf32>
    %73 = arith.addf %72, %71 : vector<8x32xf32>
    %74 = arith.divf %72, %73 : vector<8x32xf32>
    %c0_46 = arith.constant 0 : index
    %c0_47 = arith.constant 0 : index
    %75 = vector.load %arg17[%c0_46, %c0_47] : memref<32x32xf32, #tpu.memory_space<vmem>>, vector<32x32xf32>
    %cst_48 = arith.constant dense<0.000000e+00> : vector<8x32xf32>
    %76 = tpu.matmul %0, %75, %cst_48 {dimension_numbers = #tpu.dot_dimension_numbers<[1], [0], [0], [1], [0, 0, 1, 1], [], []>} : vector<8x32xf32>, vector<32x32xf32>, vector<8x32xf32> -> vector<8x32xf32>
    %c0_49 = arith.constant 0 : index
    %c0_50 = arith.constant 0 : index
    %77 = vector.load %arg21[%c0_49, %c0_50] : memref<1x32xf32, #tpu.memory_space<vmem>>, vector<1x32xf32>
    %78 = vector.broadcast %77 : vector<1x32xf32> to vector<8x32xf32>
    %79 = arith.addf %76, %78 : vector<8x32xf32>
    %c0_51 = arith.constant 0 : index
    %c0_52 = arith.constant 0 : index
    %80 = vector.load %arg11[%c0_51, %c0_52] : memref<32x32xf32, #tpu.memory_space<vmem>>, vector<32x32xf32>
    %cst_53 = arith.constant dense<0.000000e+00> : vector<8x32xf32>
    %81 = tpu.matmul %9, %80, %cst_53 {dimension_numbers = #tpu.dot_dimension_numbers<[1], [0], [0], [1], [0, 0, 1, 1], [], []>} : vector<8x32xf32>, vector<32x32xf32>, vector<8x32xf32> -> vector<8x32xf32>
    %c0_54 = arith.constant 0 : index
    %c0_55 = arith.constant 0 : index
    %82 = vector.load %arg14[%c0_54, %c0_55] : memref<32x32xf32, #tpu.memory_space<vmem>>, vector<32x32xf32>
    %cst_56 = arith.constant dense<0.000000e+00> : vector<8x32xf32>
    %83 = tpu.matmul %42, %82, %cst_56 {dimension_numbers = #tpu.dot_dimension_numbers<[1], [0], [0], [1], [0, 0, 1, 1], [], []>} : vector<8x32xf32>, vector<32x32xf32>, vector<8x32xf32> -> vector<8x32xf32>
    %84 = arith.addf %81, %83 : vector<8x32xf32>
    %c0_57 = arith.constant 0 : index
    %c0_58 = arith.constant 0 : index
    %85 = vector.load %arg20[%c0_57, %c0_58] : memref<1x32xf32, #tpu.memory_space<vmem>>, vector<1x32xf32>
    %86 = vector.broadcast %85 : vector<1x32xf32> to vector<8x32xf32>
    %87 = arith.addf %84, %86 : vector<8x32xf32>
    %88 = arith.mulf %58, %79 : vector<8x32xf32>
    %89 = arith.addf %87, %88 : vector<8x32xf32>
    %90 = math.tanh %89 : vector<8x32xf32>
    %cst_59 = arith.constant 1.000000e+00 : f32
    %91 = vector.broadcast %cst_59 : f32 to vector<8x32xf32>
    %92 = arith.subf %91, %74 : vector<8x32xf32>
    %93 = arith.mulf %92, %90 : vector<8x32xf32>
    %94 = arith.mulf %74, %0 : vector<8x32xf32>
    %95 = arith.addf %93, %94 : vector<8x32xf32>
    %c0_60 = arith.constant 0 : index
    %c0_61 = arith.constant 0 : index
    %96 = vector.load %arg22[%c0_60, %c0_61] : memref<32x128xf32, #tpu.memory_space<vmem>>, vector<32x128xf32>
    %cst_62 = arith.constant dense<0.000000e+00> : vector<8x128xf32>
    %97 = tpu.matmul %95, %96, %cst_62 {dimension_numbers = #tpu.dot_dimension_numbers<[1], [0], [0], [1], [0, 0, 1, 1], [], []>} : vector<8x32xf32>, vector<32x128xf32>, vector<8x128xf32> -> vector<8x128xf32>
    %c0_63 = arith.constant 0 : index
    %c0_64 = arith.constant 0 : index
    %98 = vector.load %arg23[%c0_63, %c0_64] : memref<32x128xf32, #tpu.memory_space<vmem>>, vector<32x128xf32>
    %cst_65 = arith.constant dense<0.000000e+00> : vector<8x128xf32>
    %99 = tpu.matmul %42, %98, %cst_65 {dimension_numbers = #tpu.dot_dimension_numbers<[1], [0], [0], [1], [0, 0, 1, 1], [], []>} : vector<8x32xf32>, vector<32x128xf32>, vector<8x128xf32> -> vector<8x128xf32>
    %100 = arith.addf %97, %99 : vector<8x128xf32>
    %c0_66 = arith.constant 0 : index
    %c0_67 = arith.constant 0 : index
    %101 = vector.load %arg24[%c0_66, %c0_67] : memref<32x128xf32, #tpu.memory_space<vmem>>, vector<32x128xf32>
    %cst_68 = arith.constant dense<0.000000e+00> : vector<8x128xf32>
    %102 = tpu.matmul %9, %101, %cst_68 {dimension_numbers = #tpu.dot_dimension_numbers<[1], [0], [0], [1], [0, 0, 1, 1], [], []>} : vector<8x32xf32>, vector<32x128xf32>, vector<8x128xf32> -> vector<8x128xf32>
    %103 = arith.addf %100, %102 : vector<8x128xf32>
    %c0_69 = arith.constant 0 : index
    %c0_70 = arith.constant 0 : index
    %104 = vector.load %arg25[%c0_69, %c0_70] : memref<1x128xf32, #tpu.memory_space<vmem>>, vector<1x128xf32>
    %105 = vector.broadcast %104 : vector<1x128xf32> to vector<8x128xf32>
    %106 = arith.addf %103, %105 : vector<8x128xf32>
    %c0_71 = arith.constant 0 : index
    %c0_72 = arith.constant 0 : index
    %107 = vector.load %arg26[%c0_71, %c0_72] : memref<8x128xf32, #tpu.memory_space<vmem>>, vector<8x128xf32>
    tpu.vector_store %arg26[%c0_71, %c0_72], %106 {strides = array<i32>} : memref<8x128xf32, #tpu.memory_space<vmem>>, vector<8x128xf32>,
    %c0_73 = arith.constant 0 : index
    %c0_74 = arith.constant 0 : index
    %108 = vector.load %arg27[%c0_73, %c0_74] : memref<8x32xf32, #tpu.memory_space<vmem>>, vector<8x32xf32>
    tpu.vector_store %arg27[%c0_73, %c0_74], %95 {strides = array<i32>} : memref<8x32xf32, #tpu.memory_space<vmem>>, vector<8x32xf32>,
    return
  }
  func.func @transform_0(%arg0: i32) -> (i32, i32) {
    %c0_i32 = arith.constant 0 : i32
    %c0_i32_0 = arith.constant 0 : i32
    %c0_i32_1 = arith.constant 0 : i32
    return %c0_i32, %c0_i32_0 : i32, i32
  }
  func.func @transform_1(%arg0: i32) -> (i32, i32) {
    %c0_i32 = arith.constant 0 : i32
    %c0_i32_0 = arith.constant 0 : i32
    %c0_i32_1 = arith.constant 0 : i32
    return %c0_i32, %c0_i32_0 : i32, i32
  }
  func.func @transform_2(%arg0: i32) -> (i32, i32, i32) {
    %c0_i32 = arith.constant 0 : i32
    %c0_i32_0 = arith.constant 0 : i32
    %c0_i32_1 = arith.constant 0 : i32
    %c0_i32_2 = arith.constant 0 : i32
    return %c0_i32, %c0_i32_0, %c0_i32_1 : i32, i32, i32
  }
  func.func @transform_3(%arg0: i32) -> (i32, i32) {
    %c0_i32 = arith.constant 0 : i32
    %c0_i32_0 = arith.constant 0 : i32
    %c0_i32_1 = arith.constant 0 : i32
    return %c0_i32, %c0_i32_0 : i32, i32
  }
  func.func @transform_4(%arg0: i32) -> (i32, i32) {
    %c0_i32 = arith.constant 0 : i32
    %c0_i32_0 = arith.constant 0 : i32
    %c0_i32_1 = arith.constant 0 : i32
    return %c0_i32, %c0_i32_0 : i32, i32
  }
  func.func @transform_5(%arg0: i32) -> (i32, i32) {
    %c0_i32 = arith.constant 0 : i32
    %c0_i32_0 = arith.constant 0 : i32
    %c0_i32_1 = arith.constant 0 : i32
    return %c0_i32, %c0_i32_0 : i32, i32
  }
  func.func @transform_6(%arg0: i32) -> (i32, i32) {
    %c0_i32 = arith.constant 0 : i32
    %c0_i32_0 = arith.constant 0 : i32
    %c0_i32_1 = arith.constant 0 : i32
    return %c0_i32, %c0_i32_0 : i32, i32
  }
  func.func @transform_7(%arg0: i32) -> (i32, i32) {
    %c0_i32 = arith.constant 0 : i32
    %c0_i32_0 = arith.constant 0 : i32
    %c0_i32_1 = arith.constant 0 : i32
    return %c0_i32, %c0_i32_0 : i32, i32
  }
  func.func @transform_8(%arg0: i32) -> (i32, i32) {
    %c0_i32 = arith.constant 0 : i32
    %c0_i32_0 = arith.constant 0 : i32
    %c0_i32_1 = arith.constant 0 : i32
    return %c0_i32, %c0_i32_0 : i32, i32
  }
  func.func @transform_9(%arg0: i32) -> (i32, i32) {
    %c0_i32 = arith.constant 0 : i32
    %c0_i32_0 = arith.constant 0 : i32
    %c0_i32_1 = arith.constant 0 : i32
    return %c0_i32, %c0_i32_0 : i32, i32
  }
  func.func @transform_10(%arg0: i32) -> (i32, i32) {
    %c0_i32 = arith.constant 0 : i32
    %c0_i32_0 = arith.constant 0 : i32
    %c0_i32_1 = arith.constant 0 : i32
    return %c0_i32, %c0_i32_0 : i32, i32
  }
  func.func @transform_11(%arg0: i32) -> (i32, i32) {
    %c0_i32 = arith.constant 0 : i32
    %c0_i32_0 = arith.constant 0 : i32
    %c0_i32_1 = arith.constant 0 : i32
    return %c0_i32, %c0_i32_0 : i32, i32
  }
  func.func @transform_12(%arg0: i32) -> (i32, i32) {
    %c0_i32 = arith.constant 0 : i32
    %c0_i32_0 = arith.constant 0 : i32
    %c0_i32_1 = arith.constant 0 : i32
    return %c0_i32, %c0_i32_0 : i32, i32
  }
  func.func @transform_13(%arg0: i32) -> (i32, i32) {
    %c0_i32 = arith.constant 0 : i32
    %c0_i32_0 = arith.constant 0 : i32
    %c0_i32_1 = arith.constant 0 : i32
    return %c0_i32, %c0_i32_0 : i32, i32
  }
  func.func @transform_14(%arg0: i32) -> (i32, i32) {
    %c0_i32 = arith.constant 0 : i32
    %c0_i32_0 = arith.constant 0 : i32
    %c0_i32_1 = arith.constant 0 : i32
    return %c0_i32, %c0_i32_0 : i32, i32
  }
  func.func @transform_15(%arg0: i32) -> (i32, i32) {
    %c0_i32 = arith.constant 0 : i32
    %c0_i32_0 = arith.constant 0 : i32
    %c0_i32_1 = arith.constant 0 : i32
    return %c0_i32, %c0_i32_0 : i32, i32
  }
  func.func @transform_16(%arg0: i32) -> (i32, i32) {
    %c0_i32 = arith.constant 0 : i32
    %c0_i32_0 = arith.constant 0 : i32
    %c0_i32_1 = arith.constant 0 : i32
    return %c0_i32, %c0_i32_0 : i32, i32
  }
  func.func @transform_17(%arg0: i32) -> (i32, i32) {
    %c0_i32 = arith.constant 0 : i32
    %c0_i32_0 = arith.constant 0 : i32
    %c0_i32_1 = arith.constant 0 : i32
    return %c0_i32, %c0_i32_0 : i32, i32
  }
  func.func @transform_18(%arg0: i32) -> (i32, i32) {
    %c0_i32 = arith.constant 0 : i32
    %c0_i32_0 = arith.constant 0 : i32
    %c0_i32_1 = arith.constant 0 : i32
    return %c0_i32, %c0_i32_0 : i32, i32
  }
  func.func @transform_19(%arg0: i32) -> (i32, i32) {
    %c0_i32 = arith.constant 0 : i32
    %c0_i32_0 = arith.constant 0 : i32
    %c0_i32_1 = arith.constant 0 : i32
    return %c0_i32, %c0_i32_0 : i32, i32
  }
  func.func @transform_20(%arg0: i32) -> (i32, i32) {
    %c0_i32 = arith.constant 0 : i32
    %c0_i32_0 = arith.constant 0 : i32
    %c0_i32_1 = arith.constant 0 : i32
    return %c0_i32, %c0_i32_0 : i32, i32
  }
  func.func @transform_21(%arg0: i32) -> (i32, i32) {
    %c0_i32 = arith.constant 0 : i32
    %c0_i32_0 = arith.constant 0 : i32
    %c0_i32_1 = arith.constant 0 : i32
    return %c0_i32, %c0_i32_0 : i32, i32
  }
  func.func @transform_22(%arg0: i32) -> (i32, i32) {
    %c0_i32 = arith.constant 0 : i32
    %c0_i32_0 = arith.constant 0 : i32
    %c0_i32_1 = arith.constant 0 : i32
    return %c0_i32, %c0_i32_0 : i32, i32
  }
  func.func @transform_23(%arg0: i32) -> (i32, i32) {
    %c0_i32 = arith.constant 0 : i32
    %c0_i32_0 = arith.constant 0 : i32
    %c0_i32_1 = arith.constant 0 : i32
    return %c0_i32, %c0_i32_0 : i32, i32
  }
  func.func @transform_24(%arg0: i32) -> (i32, i32) {
    %c0_i32 = arith.constant 0 : i32
    %c0_i32_0 = arith.constant 0 : i32
    %c0_i32_1 = arith.constant 0 : i32
    return %c0_i32, %c0_i32_0 : i32, i32
  }
  func.func @transform_25(%arg0: i32) -> (i32, i32) {
    %c0_i32 = arith.constant 0 : i32
    %c0_i32_0 = arith.constant 0 : i32
    %c0_i32_1 = arith.constant 0 : i32
    return %c0_i32, %c0_i32_0 : i32, i32
  }
  func.func @transform_26(%arg0: i32) -> (i32, i32) {
    %c0_i32 = arith.constant 0 : i32
    %c0_i32_0 = arith.constant 0 : i32
    %c0_i32_1 = arith.constant 0 : i32
    return %c0_i32, %c0_i32_0 : i32, i32
  }
}

</mosaic_0001>

<bundles_post_ra>
// kernel: tpu_custom_call.1
= control target key start
LH: loop header
LB: loop body
LE: loop exit
PB: predicated region body
PF: predicated region fallthrough
CT: control target
= control target key end

     0   :  { %s3896_s0 = inlined_call_operand.vmem [shape: s32[8,1], index: 0, kind: input, shape index: {}]   ;;  %s3897_s1 = inlined_call_operand.hbm [shape: f32[8,32], index: 1, kind: input, shape index: {}]   ;;  %s3898_s2 = inlined_call_operand.vmem [shape: f32[8,8,32], index: 2, kind: input, shape index: {}]   ;;  %s3899_s3 = inlined_call_operand.vmem [shape: f32[128,32], index: 3, kind: input, shape index: {}]   ;;  %s3900_s4 = inlined_call_operand.vmem [shape: f32[32,32], index: 4, kind: input, shape index: {}]   ;;  %s3901_s5 = inlined_call_operand.vmem [shape: f32[32,32], index: 5, kind: input, shape index: {}]   ;;  %s3902_s6 = inlined_call_operand.hbm [shape: f32[1,32], index: 6, kind: input, shape index: {}]   ;;  %s3903_s7 = inlined_call_operand.hbm [shape: f32[1,32], index: 7, kind: input, shape index: {}]   ;;  %s3904_s8 = inlined_call_operand.vmem [shape: f32[32,32], index: 8, kind: input, shape index: {}]   ;;  %s3905_s9 = inlined_call_operand.vmem [shape: f32[32,32], index: 9, kind: input, shape index: {}]   ;;  %s3906_s10 = inlined_call_operand.hbm [shape: f32[32,32], index: 10, kind: input, shape index: {}]   ;;  %s3907_s11 = inlined_call_operand.hbm [shape: f32[32,32], index: 11, kind: input, shape index: {}]   ;;  %s3908_s12 = inlined_call_operand.hbm [shape: f32[32,32], index: 12, kind: input, shape index: {}]   ;;  %s3909_s13 = inlined_call_operand.hbm [shape: f32[32,32], index: 13, kind: input, shape index: {}]   ;;  %s3910_s14 = inlined_call_operand.hbm [shape: f32[32,32], index: 14, kind: input, shape index: {}]   ;;  %s3911_s15 = inlined_call_operand.vmem [shape: f32[32,32], index: 15, kind: input, shape index: {}]   ;;  %s3912_s16 = inlined_call_operand.hbm [shape: f32[32,32], index: 16, kind: input, shape index: {}]   ;;  %s3913_s17 = inlined_call_operand.hbm [shape: f32[1,32], index: 17, kind: input, shape index: {}]   ;;  %s3914_s18 = inlined_call_operand.hbm [shape: f32[1,32], index: 18, kind: input, shape index: {}]   ;;  %s3915_s19 = inlined_call_operand.hbm [shape: f32[1,32], index: 19, kind: input, shape index: {}]   ;;  %s3916_s20 = inlined_call_operand.hbm [shape: f32[1,32], index: 20, kind: input, shape index: {}]   ;;  %s3917_s21 = inlined_call_operand.hbm [shape: f32[32,128], index: 21, kind: input, shape index: {}]   ;;  %s3918_s22 = inlined_call_operand.hbm [shape: f32[32,128], index: 22, kind: input, shape index: {}]   ;;  %s3919_s23 = inlined_call_operand.vmem [shape: f32[32,128], index: 23, kind: input, shape index: {}]   ;;  %s3920_s24 = inlined_call_operand.vmem [shape: f32[1,128], index: 24, kind: input, shape index: {}]   ;;  %s3921_s25 = inlined_call_operand.hbm [shape: f32[8,128], index: 25, kind: output, shape index: {0}]   ;;  %s3922_s26 = inlined_call_operand.hbm [shape: f32[8,32], index: 26, kind: output, shape index: {1}]  }
   0x1   :  { %3934 = sst [smem:[#allocation39_spill]] %s3896_s0 }
   0x2   :  { %3935 = sst [smem:[#allocation40_spill]] %s3897_s1 }
   0x3   :  { %3936 = sst [smem:[#allocation41_spill]] %s3898_s2 }
   0x4   :  { %3937 = sst [smem:[#allocation42_spill]] %s3899_s3 }
   0x5   :  { %3938 = sst [smem:[#allocation43_spill]] %s3900_s4 }
   0x6   :  { %3939 = sst [smem:[#allocation44_spill]] %s3901_s5 }
   0x7   :  { %3940 = sst [smem:[#allocation45_spill]] %s3902_s6 }
   0x8   :  { %3941 = sst [smem:[#allocation46_spill]] %s3903_s7 }
   0x9   :  { %3942 = sst [smem:[#allocation47_spill]] %s3904_s8 }
   0xa   :  { %3943 = sst [smem:[#allocation48_spill]] %s3905_s9 }
   0xb   :  { %3944 = sst [smem:[#allocation49_spill]] %s3906_s10 }
   0xc   :  { %3945 = sst [smem:[#allocation50_spill]] %s3920_s24 }
   0xd   :  { %3946 = sst [smem:[#allocation51_spill]] %s3921_s25 }
   0xe   :  { %32 = vsyncpa [#allocation3], 0 }
   0xf   :  { %33 = vsyncpa [#allocation6], 0 }
  0x10   :  { %34 = vsyncpa [#allocation9], 0 }
  0x11   :  { %35 = vsyncpa [#allocation12], 0 }
  0x12   :  { %36 = vsyncpa [#allocation15], 0 }
  0x13   :  { %37 = vsyncpa [#allocation18], 0 }
  0x14   :  { %38 = vsyncpa [#allocation21], 0 }
  0x15   :  { %39 = vsyncpa [#allocation24], 0 }
  0x16   :  { %40 = vsyncpa [#allocation4], 0 }
  0x17   :  { %41 = vsyncpa [#allocation28], 0  ;;  %s3011_s27 = smov [#allocation5]   ;;  %s3012_s7 = smov [#allocation8]  }
  0x18   :  { %s68_s3 = sshll.u32 %s3011_s27, 4  ;;  %s91_s28 = sshll.u32 %s3012_s7, 4  ;;  %s69_s3 = int_to_ptr.vmem [resolvable:$true] %s68_s3  ;;  %s3171_s28 = int_to_ptr.vmem [resolvable:$true] %s91_s28 }
  0x19   :  { %s3947_s29 = sld [smem:[#allocation45_spill]] }
  0x1f   :  { %s2617_s0 = scalar_lea.hbm %s3947_s29, 16 }
  0x20   :  { %p2618_p0 = scmp.ne.s32.totalorder %s3947_s29, %s2617_s0  ;;  %p2621_p1 = scmp.lt.u32.totalorder %s2617_s0, %s3947_s29 }
  0x22   :  { %p2623_p2 = pnand %p2621_p1, %p2618_p0 }
  0x24   :  { %2626 = shalt.err (!%p2623_p2)
}
  0x25   :  { %s2627_s10 = scalar_lea.vmem %s69_s3, 16  ;;  %s2631_s6 = scalar_lea.vmem %s69_s3, 32 }
  0x26   :  { %p2628_p3 = scmp.ne.s32.totalorder %s69_s3, %s2627_s10  ;;  %p2632_p4 = scmp.lt.s32.totalorder %s69_s3, %s69_s3 }
  0x27   :  { %p2633_p5 = scmp.lt.s32.totalorder %s2631_s6, %s2627_s10 }
  0x29   :  { %p2634_p6 = por %p2633_p5, %p2632_p4 }
  0x2b   :  { %p2635_p7 = pnand %p2634_p6, %p2628_p3 }
  0x2d   :  { %2638 = shalt.err (!%p2635_p7)
}
  0x2e   :  { %71 = dma.hbm_to_vmem [thread:$0]  %s3947_s29, 16, %s69_s3, [#allocation6]  }
  0x2f   :  { %s3948_s4 = sld [smem:[#allocation49_spill]] }
  0x35   :  { %s2639_s9 = scalar_lea.hbm %s3948_s4, 512 }
  0x36   :  { %p2640_p8 = scmp.ne.s32.totalorder %s3948_s4, %s2639_s9  ;;  %p2643_p9 = scmp.lt.u32.totalorder %s2639_s9, %s3948_s4 }
  0x38   :  { %p2645_p10 = pnand %p2643_p9, %p2640_p8 }
  0x3a   :  { %2648 = shalt.err (!%p2645_p10)
}
  0x3b   :  { %s2649_s10 = scalar_lea.vmem %s3171_s28, 512  ;;  %p2654_p12 = scmp.lt.s32.totalorder %s3171_s28, %s3171_s28 }
  0x3c   :  { %p2650_p11 = scmp.ne.s32.totalorder %s3171_s28, %s2649_s10  ;;  %p2655_p13 = scmp.lt.s32.totalorder %s2649_s10, %s2649_s10 }
  0x3e   :  { %p2656_p0 = por %p2655_p13, %p2654_p12 }
  0x40   :  { %p2657_p1 = pnand %p2656_p0, %p2650_p11 }
  0x42   :  { %2660 = shalt.err (!%p2657_p1)
}
  0x43   :  { %s3013_s3 = smov 128   ;;  %s3014_s29 = smov 8  }
  0x44   :  { %97 = dma.hbm_to_vmem [thread:$0]  %s3948_s4, 512, %s3171_s28, [#allocation9], %s3013_s3, %s3013_s3, %s3014_s29  }
  0x45   :  { %s3015_s27 = smov [#allocation11]   ;;  %s3016_s8 = smov [#allocation14]  }
  0x46   :  { %s115_s7 = sshll.u32 %s3015_s27, 4  ;;  %s139_s9 = sshll.u32 %s3016_s8, 4  ;;  %s116_s7 = int_to_ptr.vmem [resolvable:$true] %s115_s7  ;;  %s3205_s9 = int_to_ptr.vmem [resolvable:$true] %s139_s9 }
  0x47   :  { %s2661_s2 = scalar_lea.hbm %s3908_s12, 512 }
  0x48   :  { %p2662_p2 = scmp.ne.s32.totalorder %s3908_s12, %s2661_s2  ;;  %p2665_p3 = scmp.lt.u32.totalorder %s2661_s2, %s3908_s12 }
  0x4a   :  { %p2667_p4 = pnand %p2665_p3, %p2662_p2 }
  0x4c   :  { %2670 = shalt.err (!%p2667_p4)
}
  0x4d   :  { %s2671_s28 = scalar_lea.vmem %s116_s7, 512  ;;  %p2676_p6 = scmp.lt.s32.totalorder %s116_s7, %s116_s7 }
  0x4e   :  { %p2672_p5 = scmp.ne.s32.totalorder %s116_s7, %s2671_s28  ;;  %p2677_p7 = scmp.lt.s32.totalorder %s2671_s28, %s2671_s28 }
  0x50   :  { %p2678_p8 = por %p2677_p7, %p2676_p6 }
  0x52   :  { %p2679_p9 = pnand %p2678_p8, %p2672_p5 }
  0x54   :  { %2682 = shalt.err (!%p2679_p9)
}
  0x55   :  { %121 = dma.hbm_to_vmem [thread:$0]  %s3908_s12, 512, %s116_s7, [#allocation12], %s3013_s3, %s3013_s3, %s3014_s29  }
  0x56   :  { %s2683_s24 = scalar_lea.hbm %s3910_s14, 512 }
  0x57   :  { %p2684_p10 = scmp.ne.s32.totalorder %s3910_s14, %s2683_s24  ;;  %p2687_p11 = scmp.lt.u32.totalorder %s2683_s24, %s3910_s14 }
  0x59   :  { %p2689_p12 = pnand %p2687_p11, %p2684_p10 }
  0x5b   :  { %2692 = shalt.err (!%p2689_p12)
}
  0x5c   :  { %s2693_s2 = scalar_lea.vmem %s3205_s9, 512  ;;  %p2698_p0 = scmp.lt.s32.totalorder %s3205_s9, %s3205_s9 }
  0x5d   :  { %p2694_p13 = scmp.ne.s32.totalorder %s3205_s9, %s2693_s2  ;;  %p2699_p1 = scmp.lt.s32.totalorder %s2693_s2, %s2693_s2 }
  0x5f   :  { %p2700_p2 = por %p2699_p1, %p2698_p0 }
  0x61   :  { %p2701_p3 = pnand %p2700_p2, %p2694_p13 }
  0x63   :  { %2704 = shalt.err (!%p2701_p3)
}
  0x64   :  { %145 = dma.hbm_to_vmem [thread:$0]  %s3910_s14, 512, %s3205_s9, [#allocation15], %s3013_s3, %s3013_s3, %s3014_s29  }
  0x65   :  { %s3017_s5 = smov [#allocation17]   ;;  %s3018_s28 = smov [#allocation20]  }
  0x66   :  { %s166_s10 = sshll.u32 %s3017_s5, 4  ;;  %s186_s4 = sshll.u32 %s3018_s28, 4  ;;  %s167_s10 = int_to_ptr.vmem [resolvable:$true] %s166_s10  ;;  %s187_s4 = int_to_ptr.vmem [resolvable:$true] %s186_s4 }
  0x67   :  { %s2705_s27 = scalar_lea.hbm %s3913_s17, 16 }
  0x68   :  { %p2706_p4 = scmp.ne.s32.totalorder %s3913_s17, %s2705_s27  ;;  %p2709_p5 = scmp.lt.u32.totalorder %s2705_s27, %s3913_s17 }
  0x6a   :  { %p2711_p6 = pnand %p2709_p5, %p2706_p4 }
  0x6c   :  { %2714 = shalt.err (!%p2711_p6)
}
  0x6d   :  { %s2715_s14 = scalar_lea.vmem %s167_s10, 16  ;;  %s2719_s9 = scalar_lea.vmem %s167_s10, 32 }
  0x6e   :  { %p2716_p7 = scmp.ne.s32.totalorder %s167_s10, %s2715_s14  ;;  %p2720_p8 = scmp.lt.s32.totalorder %s167_s10, %s167_s10 }
  0x6f   :  { %p2721_p9 = scmp.lt.s32.totalorder %s2719_s9, %s2715_s14 }
  0x71   :  { %p2722_p10 = por %p2721_p9, %p2720_p8 }
  0x73   :  { %p2723_p11 = pnand %p2722_p10, %p2716_p7 }
  0x75   :  { %2726 = shalt.err (!%p2723_p11)
}
  0x76   :  { %169 = dma.hbm_to_vmem [thread:$0]  %s3913_s17, 16, %s167_s10, [#allocation18]  }
  0x77   :  { %s2727_s5 = scalar_lea.hbm %s3915_s19, 16 }
  0x78   :  { %p2728_p12 = scmp.ne.s32.totalorder %s3915_s19, %s2727_s5  ;;  %p2731_p13 = scmp.lt.u32.totalorder %s2727_s5, %s3915_s19 }
  0x7a   :  { %p2733_p0 = pnand %p2731_p13, %p2728_p12 }
  0x7c   :  { %2736 = shalt.err (!%p2733_p0)
}
  0x7d   :  { %s2737_s24 = scalar_lea.vmem %s187_s4, 16  ;;  %s2741_s25 = scalar_lea.vmem %s187_s4, 32 }
  0x7e   :  { %p2738_p1 = scmp.ne.s32.totalorder %s187_s4, %s2737_s24  ;;  %p2742_p2 = scmp.lt.s32.totalorder %s187_s4, %s187_s4 }
  0x7f   :  { %p2743_p3 = scmp.lt.s32.totalorder %s2741_s25, %s2737_s24 }
  0x81   :  { %p2744_p4 = por %p2743_p3, %p2742_p2 }
  0x83   :  { %p2745_p5 = pnand %p2744_p4, %p2738_p1 }
  0x85   :  { %2748 = shalt.err (!%p2745_p5)
}
  0x86   :  { %189 = dma.hbm_to_vmem [thread:$0]  %s3915_s19, 16, %s187_s4, [#allocation21]  }
  0x87   :  { %s3019_s8 = smov [#allocation23]   ;;  %s3020_s14 = smov [#allocation2]  }
  0x88   :  { %s205_s30 = sshll.u32 %s3019_s8, 4  ;;  %s50_s9 = sshll.u32 %s3020_s14, 4  ;;  %s206_s30 = int_to_ptr.vmem [resolvable:$true] %s205_s30  ;;  %s51_s9 = int_to_ptr.vmem [resolvable:$true] %s50_s9 }
  0x89   :  { %s2749_s12 = scalar_lea.hbm %s3917_s21, 512 }
  0x8a   :  { %p2750_p6 = scmp.ne.s32.totalorder %s3917_s21, %s2749_s12  ;;  %p2753_p7 = scmp.lt.u32.totalorder %s2749_s12, %s3917_s21 }
  0x8c   :  { %p2755_p8 = pnand %p2753_p7, %p2750_p6 }
  0x8e   :  { %2758 = shalt.err (!%p2755_p8)
}
  0x8f   :  { %s2759_s19 = scalar_lea.vmem %s206_s30, 512  ;;  %p2764_p10 = scmp.lt.s32.totalorder %s206_s30, %s206_s30 }
  0x90   :  { %p2760_p9 = scmp.ne.s32.totalorder %s206_s30, %s2759_s19  ;;  %p2765_p11 = scmp.lt.s32.totalorder %s2759_s19, %s2759_s19 }
  0x92   :  { %p2766_p12 = por %p2765_p11, %p2764_p10 }
  0x94   :  { %p2767_p13 = pnand %p2766_p12, %p2760_p9 }
  0x96   :  { %2770 = shalt.err (!%p2767_p13)
}
  0x97   :  { %211 = dma.hbm_to_vmem [thread:$0]  %s3917_s21, 512, %s206_s30, [#allocation24], %s3013_s3, %s3013_s3, %s3014_s29  }
  0x98   :  { %s3949_s25 = sld [smem:[#allocation40_spill]] }
  0x9e   :  { %s2771_s17 = scalar_lea.hbm %s3949_s25, 128 }
  0x9f   :  { %p2772_p0 = scmp.ne.s32.totalorder %s3949_s25, %s2771_s17  ;;  %p2775_p1 = scmp.lt.u32.totalorder %s2771_s17, %s3949_s25 }
  0xa1   :  { %p2777_p2 = pnand %p2775_p1, %p2772_p0 }
  0xa3   :  { %2780 = shalt.err (!%p2777_p2)
}
  0xa4   :  { %s2781_s2 = scalar_lea.vmem %s51_s9, 128  ;;  %p2786_p4 = scmp.lt.s32.totalorder %s51_s9, %s51_s9 }
  0xa5   :  { %p2782_p3 = scmp.ne.s32.totalorder %s51_s9, %s2781_s2  ;;  %p2787_p5 = scmp.lt.s32.totalorder %s2781_s2, %s2781_s2 }
  0xa7   :  { %p2788_p6 = por %p2787_p5, %p2786_p4 }
  0xa9   :  { %p2789_p7 = pnand %p2788_p6, %p2782_p3 }
  0xab   :  { %2792 = shalt.err (!%p2789_p7)
}
  0xac   :  { %53 = dma.hbm_to_vmem [thread:$0]  %s3949_s25, 128, %s51_s9, [#allocation3]  }
  0xad   :  { %s3021_s12 = smov [#allocation7]   ;;  %s3022_s5 = smov [#allocation10]  }
  0xae   :  { %s78_s7 = sshll.u32 %s3021_s12, 4  ;;  %s103_s28 = sshll.u32 %s3022_s5, 4  ;;  %s79_s7 = int_to_ptr.vmem [resolvable:$true] %s78_s7  ;;  %s3293_s28 = int_to_ptr.vmem [resolvable:$true] %s103_s28 }
  0xaf   :  { %s3950_s4 = sld [smem:[#allocation46_spill]] }
  0xb5   :  { %s2793_s1 = scalar_lea.hbm %s3950_s4, 16 }
  0xb6   :  { %p2794_p8 = scmp.ne.s32.totalorder %s3950_s4, %s2793_s1  ;;  %p2797_p9 = scmp.lt.u32.totalorder %s2793_s1, %s3950_s4 }
  0xb8   :  { %p2799_p10 = pnand %p2797_p9, %p2794_p8 }
  0xba   :  { %2802 = shalt.err (!%p2799_p10)
}
  0xbb   :  { %s2803_s9 = scalar_lea.vmem %s79_s7, 16  ;;  %s2807_s25 = scalar_lea.vmem %s79_s7, 32 }
  0xbc   :  { %p2804_p11 = scmp.ne.s32.totalorder %s79_s7, %s2803_s9  ;;  %p2808_p12 = scmp.lt.s32.totalorder %s79_s7, %s79_s7 }
  0xbd   :  { %p2809_p13 = scmp.lt.s32.totalorder %s2807_s25, %s2803_s9 }
  0xbf   :  { %p2810_p0 = por %p2809_p13, %p2808_p12 }
  0xc1   :  { %p2811_p1 = pnand %p2810_p0, %p2804_p11 }
  0xc3   :  { %2814 = shalt.err (!%p2811_p1)
}
  0xc4   :  { %81 = dma.hbm_to_vmem [thread:$0]  %s3950_s4, 16, %s79_s7, [#allocation6]  }
  0xc5   :  { %s2815_s21 = scalar_lea.hbm %s3907_s11, 512 }
  0xc6   :  { %p2816_p2 = scmp.ne.s32.totalorder %s3907_s11, %s2815_s21  ;;  %p2819_p3 = scmp.lt.u32.totalorder %s2815_s21, %s3907_s11 }
  0xc8   :  { %p2821_p4 = pnand %p2819_p3, %p2816_p2 }
  0xca   :  { %2824 = shalt.err (!%p2821_p4)
}
  0xcb   :  { %s2825_s19 = scalar_lea.vmem %s3293_s28, 512  ;;  %p2830_p6 = scmp.lt.s32.totalorder %s3293_s28, %s3293_s28 }
  0xcc   :  { %p2826_p5 = scmp.ne.s32.totalorder %s3293_s28, %s2825_s19  ;;  %p2831_p7 = scmp.lt.s32.totalorder %s2825_s19, %s2825_s19 }
  0xce   :  { %p2832_p8 = por %p2831_p7, %p2830_p6 }
  0xd0   :  { %p2833_p9 = pnand %p2832_p8, %p2826_p5 }
  0xd2   :  { %2836 = shalt.err (!%p2833_p9)
}
  0xd3   :  { %109 = dma.hbm_to_vmem [thread:$0]  %s3907_s11, 512, %s3293_s28, [#allocation9], %s3013_s3, %s3013_s3, %s3014_s29  }
  0xd4   :  { %s3023_s1 = smov [#allocation13]   ;;  %s3024_s24 = smov [#allocation16]  }
  0xd5   :  { %s127_s27 = sshll.u32 %s3023_s1, 4  ;;  %s153_s17 = sshll.u32 %s3024_s24, 4  ;;  %s128_s27 = int_to_ptr.vmem [resolvable:$true] %s127_s27  ;;  %s3327_s17 = int_to_ptr.vmem [resolvable:$true] %s153_s17 }
  0xd6   :  { %s2837_s25 = scalar_lea.hbm %s3909_s13, 512 }
  0xd7   :  { %p2838_p10 = scmp.ne.s32.totalorder %s3909_s13, %s2837_s25  ;;  %p2841_p11 = scmp.lt.u32.totalorder %s2837_s25, %s3909_s13 }
  0xd9   :  { %p2843_p12 = pnand %p2841_p11, %p2838_p10 }
  0xdb   :  { %2846 = shalt.err (!%p2843_p12)
}
  0xdc   :  { %s2847_s11 = scalar_lea.vmem %s128_s27, 512  ;;  %p2852_p0 = scmp.lt.s32.totalorder %s128_s27, %s128_s27 }
  0xdd   :  { %p2848_p13 = scmp.ne.s32.totalorder %s128_s27, %s2847_s11  ;;  %p2853_p1 = scmp.lt.s32.totalorder %s2847_s11, %s2847_s11 }
  0xdf   :  { %p2854_p2 = por %p2853_p1, %p2852_p0 }
  0xe1   :  { %p2855_p3 = pnand %p2854_p2, %p2848_p13 }
  0xe3   :  { %2858 = shalt.err (!%p2855_p3)
}
  0xe4   :  { %133 = dma.hbm_to_vmem [thread:$0]  %s3909_s13, 512, %s128_s27, [#allocation12], %s3013_s3, %s3013_s3, %s3014_s29  }
  0xe5   :  { %s2859_s5 = scalar_lea.hbm %s3912_s16, 512 }
  0xe6   :  { %p2860_p4 = scmp.ne.s32.totalorder %s3912_s16, %s2859_s5  ;;  %p2863_p5 = scmp.lt.u32.totalorder %s2859_s5, %s3912_s16 }
  0xe8   :  { %p2865_p6 = pnand %p2863_p5, %p2860_p4 }
  0xea   :  { %2868 = shalt.err (!%p2865_p6)
}
  0xeb   :  { %s2869_s1 = scalar_lea.vmem %s3327_s17, 512  ;;  %p2874_p8 = scmp.lt.s32.totalorder %s3327_s17, %s3327_s17 }
  0xec   :  { %p2870_p7 = scmp.ne.s32.totalorder %s3327_s17, %s2869_s1  ;;  %p2875_p9 = scmp.lt.s32.totalorder %s2869_s1, %s2869_s1 }
  0xee   :  { %p2876_p10 = por %p2875_p9, %p2874_p8 }
  0xf0   :  { %p2877_p11 = pnand %p2876_p10, %p2870_p7 }
  0xf2   :  { %2880 = shalt.err (!%p2877_p11)
}
  0xf3   :  { %159 = dma.hbm_to_vmem [thread:$0]  %s3912_s16, 512, %s3327_s17, [#allocation15], %s3013_s3, %s3013_s3, %s3014_s29  }
  0xf4   :  { %s3025_s24 = smov [#allocation19]   ;;  %s3026_s9 = smov [#allocation22]  }
  0xf5   :  { %s176_s10 = sshll.u32 %s3025_s24, 4  ;;  %s196_s25 = sshll.u32 %s3026_s9, 4  ;;  %s177_s10 = int_to_ptr.vmem [resolvable:$true] %s176_s10  ;;  %s197_s25 = int_to_ptr.vmem [resolvable:$true] %s196_s25 }
  0xf6   :  { %s2881_s0 = scalar_lea.hbm %s3914_s18, 16 }
  0xf7   :  { %p2882_p12 = scmp.ne.s32.totalorder %s3914_s18, %s2881_s0  ;;  %p2885_p13 = scmp.lt.u32.totalorder %s2881_s0, %s3914_s18 }
  0xf9   :  { %p2887_p0 = pnand %p2885_p13, %p2882_p12 }
  0xfb   :  { %2890 = shalt.err (!%p2887_p0)
}
  0xfc   :  { %s2891_s16 = scalar_lea.vmem %s177_s10, 16  ;;  %s2895_s17 = scalar_lea.vmem %s177_s10, 32 }
  0xfd   :  { %p2892_p1 = scmp.ne.s32.totalorder %s177_s10, %s2891_s16  ;;  %p2896_p2 = scmp.lt.s32.totalorder %s177_s10, %s177_s10 }
  0xfe   :  { %p2897_p3 = scmp.lt.s32.totalorder %s2895_s17, %s2891_s16 }
 0x100   :  { %p2898_p4 = por %p2897_p3, %p2896_p2 }
 0x102   :  { %p2899_p5 = pnand %p2898_p4, %p2892_p1 }
 0x104   :  { %2902 = shalt.err (!%p2899_p5)
}
 0x105   :  { %179 = dma.hbm_to_vmem [thread:$0]  %s3914_s18, 16, %s177_s10, [#allocation18]  }
 0x106   :  { %s2903_s19 = scalar_lea.hbm %s3916_s20, 16 }
 0x107   :  { %p2904_p6 = scmp.ne.s32.totalorder %s3916_s20, %s2903_s19  ;;  %p2907_p7 = scmp.lt.u32.totalorder %s2903_s19, %s3916_s20 }
 0x109   :  { %p2909_p8 = pnand %p2907_p7, %p2904_p6 }
 0x10b   :  { %2912 = shalt.err (!%p2909_p8)
}
 0x10c   :  { %s2913_s27 = scalar_lea.vmem %s197_s25, 16  ;;  %s2917_s24 = scalar_lea.vmem %s197_s25, 32 }
 0x10d   :  { %p2914_p9 = scmp.ne.s32.totalorder %s197_s25, %s2913_s27  ;;  %p2918_p10 = scmp.lt.s32.totalorder %s197_s25, %s197_s25 }
 0x10e   :  { %p2919_p11 = scmp.lt.s32.totalorder %s2917_s24, %s2913_s27 }
 0x110   :  { %p2920_p12 = por %p2919_p11, %p2918_p10 }
 0x112   :  { %p2921_p13 = pnand %p2920_p12, %p2914_p9 }
 0x114   :  { %2924 = shalt.err (!%p2921_p13)
}
 0x115   :  { %199 = dma.hbm_to_vmem [thread:$0]  %s3916_s20, 16, %s197_s25, [#allocation21]  }
 0x116   :  { %s3027_s9 = smov [#allocation25]   ;;  %s2925_s2 = scalar_lea.hbm %s3918_s22, 512 }
 0x117   :  { %s217_s8 = sshll.u32 %s3027_s9, 4  ;;  %p2926_p0 = scmp.ne.s32.totalorder %s3918_s22, %s2925_s2  ;;  %s218_s8 = int_to_ptr.vmem [resolvable:$true] %s217_s8 }
 0x118   :  { %p2929_p1 = scmp.lt.u32.totalorder %s2925_s2, %s3918_s22 }
 0x11a   :  { %p2931_p2 = pnand %p2929_p1, %p2926_p0 }
 0x11c   :  { %2934 = shalt.err (!%p2931_p2)
}
 0x11d   :  { %s2935_s17 = scalar_lea.vmem %s218_s8, 512  ;;  %p2940_p4 = scmp.lt.s32.totalorder %s218_s8, %s218_s8 }
 0x11e   :  { %p2936_p3 = scmp.ne.s32.totalorder %s218_s8, %s2935_s17  ;;  %p2941_p5 = scmp.lt.s32.totalorder %s2935_s17, %s2935_s17 }
 0x120   :  { %p2942_p6 = por %p2941_p5, %p2940_p4 }
 0x122   :  { %p2943_p7 = pnand %p2942_p6, %p2936_p3 }
 0x124   :  { %2946 = shalt.err (!%p2943_p7)
}
 0x125   :  { %223 = dma.hbm_to_vmem [thread:$0]  %s3918_s22, 512, %s218_s8, [#allocation24], %s3013_s3, %s3013_s3, %s3014_s29  }
 0x126   :  { %2991 = dma.done.wait [#allocation3], 128  }
 0x127   :  { %2992 = vsyncadd [#allocation3], 4294967168 }
 0x128   :  { %2993 = dma.done.wait [#allocation6], 32  }
 0x129   :  { %2994 = vsyncadd [#allocation6], 4294967264 }
 0x12a   :  { %2995 = dma.done.wait [#allocation9], 1024  }
 0x12b   :  { %2996 = vsyncadd [#allocation9], 4294966272 }
 0x12c   :  { %2997 = dma.done.wait [#allocation12], 1024  }
 0x12d   :  { %2998 = vsyncadd [#allocation12], 4294966272 }
 0x12e   :  { %2999 = dma.done.wait [#allocation15], 1024  }
 0x12f   :  { %3000 = vsyncadd [#allocation15], 4294966272 }
 0x130   :  { %3001 = dma.done.wait [#allocation18], 32  }
 0x131   :  { %3002 = vsyncadd [#allocation18], 4294967264 }
 0x132   :  { %3003 = dma.done.wait [#allocation21], 32  }
 0x133   :  { %3004 = vsyncadd [#allocation21], 4294967264 }
 0x134   :  { %3005 = dma.done.wait [#allocation24], 1024  }
 0x135   :  { %3006 = vsyncadd [#allocation24], 4294966272  ;;  %v3028_v0 = vmov 0.0|0.0   ;;  %vm3029_vm0 = vmmov 0   ;;  %v3030_v1 = vmov 0.0   ;;  %s3951_s29 = sld [smem:[#allocation43_spill]]  ;;  %v283_v23 = vlaneseq }
 0x136   :  { %2459 = vmatprep.subr.bf16.mxu1 %v3028_v0  ;;  %2280 = vmatprep.mubr.msk.f32.mxu1 %vm3029_vm0, %v3030_v1  ;;  %s3952_s13 = sld [smem:[#allocation44_spill]]  ;;  %v3434_v13 = vld [vmem:[#allocation2] sm:$0xff]  ;;  %vm381_vm1 = vcmask 261120   ;;  %s3953_s2 = sld [smem:[#allocation41_spill]]  ;;  %v3031_v24 = vmov 1966171168  }
 0x137   :  { %2435 = vmatprep.subr.bf16.mxu0 %v3028_v0  ;;  %2269 = vmatprep.mubr.msk.f32.mxu0 %vm3029_vm0, %v3030_v1  ;;  %v591_v25 = vunpack.c.l.s4 %v3031_v24  ;;  %v3498_v27 = vshrl.u32 %v283_v23, 7  ;;  %v2122_v42 = vld [vmem:[#allocation5] ss:$0 sm:$0xff]  ;;  %vm788_vm2 = vcmask 1041409   ;;  %vm790_vm3 = vcmask 1042434   ;;  %s3954_s4 = sld [smem:[#allocation39_spill]] }
 0x138   :  { %vm792_vm4 = vcmask 1043459   ;;  %vm794_vm5 = vcmask 1044484   ;;  %vm796_vm6 = vcmask 1045509   ;;  %vm798_vm7 = vcmask 1046534   ;;  %s3955_s27 = sld [smem:[#allocation42_spill]]  ;;  %s3956_s8 = sld [smem:[#allocation47_spill]] }
 0x139   :  { %v592_v26 = vunpack.c.0.s8 %v591_v25  ;;  %v3502_v35 = vsub.s32 0, %v3498_v27  ;;  %vm800_vm8 = vcmask 1047559   ;;  %vm803_vm9 = vcmask 64512   ;;  %s3957_s6 = sld [smem:[#allocation48_spill]] }
 0x13b   :  { %v377_v2 = vld [vmem:[%s3951_s29] sm:$0xff]  ;;  %v378_v3 = vld [vmem:[%s3951_s29 + $0x8] sm:$0xff]  ;;  %v379_v4 = vld [vmem:[%s3951_s29 + $0x10] sm:$0xff]  ;;  %v595_v28 = vsub.s32 %v592_v26, %v3498_v27 }
 0x13c   :  { %v2460_v5 = vpack.c.bf16 %v378_v3, %v377_v2  ;;  %v380_v6 = vld [vmem:[%s3951_s29 + $0x18] sm:$0xff]  ;;  %v455_v7 = vld [vmem:[%s3952_s13] sm:$0xff]  ;;  %v456_v8 = vld [vmem:[%s3952_s13 + $0x8] sm:$0xff] }
 0x13d   :  { %v2463_v9 = vpack.c.bf16 %v380_v6, %v379_v4  ;;  %v2465_v10 = vpack.c.bf16 %v456_v8, %v455_v7  ;;  %v457_v11 = vld [vmem:[%s3952_s13 + $0x10] sm:$0xff]  ;;  %v458_v12 = vld [vmem:[%s3952_s13 + $0x18] sm:$0xff]  ;;  %v3439_v15 = vld [vmem:[%s3953_s2] sm:$0xff] }
 0x13e   :  { %2461 = vmatpush3.bf16.msra.mxu1 %v2460_v5  ;;  %v2469_v14 = vpack.c.bf16 %v458_v12, %v457_v11  ;;  %v3448_v16 = vld [vmem:[%s3953_s2 + $0x8] sm:$0xff]  ;;  %v3453_v17 = vld [vmem:[%s3953_s2 + $0x10] sm:$0xff]  ;;  %v3463_v18 = vld [vmem:[%s3953_s2 + $0x18] sm:$0xff] }
 0x13f   :  { %2462 = vmatprep.subr.bf16.mxu1 %v3028_v0  ;;  %v3468_v19 = vld [vmem:[%s3953_s2 + $0x20] sm:$0xff]  ;;  %v3477_v20 = vld [vmem:[%s3953_s2 + $0x28] sm:$0xff]  ;;  %v3482_v21 = vld [vmem:[%s3953_s2 + $0x30] sm:$0xff] }
 0x140   :  { %v3491_v22 = vld [vmem:[%s3953_s2 + $0x38] sm:$0xff] }
 0x142   :  { %2464 = vmatpush3.bf16.msra.mxu1 %v2463_v9 }
 0x143   :  { %2466 = vmatprep.subr.bf16.mxu1 %v2465_v10 }
 0x145   :  { %2281 = vmatmul.mubr.msk.f32.vlgmr.msra.gmra.mrb[0].mxu1 %vm381_vm1, %v3434_v13 }
 0x146   :  { %2468 = vmatpush3.bf16.msra.mxu1 %v2465_v10  ;;  %2291 = vmatprep.mubr.msk.f32.mxu1 %vm381_vm1, %v3439_v15 }
 0x147   :  { %2470 = vmatprep.subr.bf16.mxu1 %v2469_v14 }
 0x14a   :  { %2472 = vmatpush3.bf16.msra.mxu1 %v2469_v14  ;;  %v2123_v14 = vld [vmem:[#allocation7] ss:$0 sm:$0xff] }
 0x14b   :  { %2473 = vmatprep.subr.bf16.mxu1 %v3028_v0 }
 0x14d   :  { %2292 = vmatmul.mubr.msk.f32.vlgmr.msra.gmra.mrb[2].mxu1 %vm381_vm1, %v3448_v16 }
 0x14e   :  { %2294 = vmatprep.mubr.msk.f32.mxu1 %vm381_vm1, %v3453_v17 }
 0x151   :  { %2295 = vmatmul.mubr.msk.f32.gmra.mrb[4].mxu1 %vm381_vm1, %v3463_v18 }
 0x152   :  { %2297 = vmatprep.mubr.msk.f32.mxu1 %vm381_vm1, %v3468_v19 }
 0x155   :  { %2298 = vmatmul.mubr.msk.f32.gmra.mrb[6].mxu1 %vm381_vm1, %v3477_v20 }
 0x156   :  { %2300 = vmatprep.mubr.msk.f32.mxu1 %vm381_vm1, %v3482_v21 }
 0x159   :  { %2301 = vmatmul.mubr.msk.f32.gmra.mrb[8].mxu1 %vm381_vm1, %v3491_v22 }
 0x15a   :  { %2311 = vmatprep.mubr.msk.f32.mxu1 %vm3029_vm0, %v3030_v1 }
 0x218   :  { %v451_v29 = vpop.f32.mrb[0].mxu1 }
 0x219   :  { %v589_v30 = vcombine.high %v451_v29, %v451_v29  ;;  %v596_v31 = vrot.slane %v451_v29, %v595_v28  ;;  %v2282_v32 = vpop.f32.mrb[1].mxu1 }
 0x21b   :  { %v603_v33 = vrot.slane %v589_v30, %v595_v28  ;;  %v604_v34 = vcombine.high %v596_v31, %v596_v31  ;;  %v612_v36 = vrot.slane %v596_v31, %v595_v28 }
 0x21d   :  { %v626_v37 = vrot.slane %v604_v34, %v595_v28  ;;  %v605_v38 = vcombine.high %v603_v33, %v603_v33  ;;  %v641_v43 = vrot.slane %v612_v36, %v3502_v35  ;;  %v634_v44 = vcombine.high %v612_v36, %v612_v36 }
 0x21e   :  { %v619_v54 = vrot.slane %v603_v33, %v595_v28 }
 0x21f   :  { %v645_v39 = vrot.slane %v626_v37, %v3502_v35  ;;  %v636_v40 = vcombine.high %v626_v37, %v626_v37  ;;  %v633_v50 = vrot.slane %v605_v38, %v595_v28  ;;  %v649_v53 = vrot.slane %v634_v44, %v3502_v35 }
 0x220   :  { %v2293_v41 = vpop.f32.mrb[2].mxu1  ;;  %v657_v63 = vrot.slane %v619_v54, %v3502_v35  ;;  %v635_v2 = vcombine.high %v619_v54, %v619_v54 }
 0x221   :  { %v679_v45 = vadd.f32 %v2293_v41, %v645_v39  ;;  %v549_v46 = vpop.f32.mrb[3].mxu1  ;;  %v653_v47 = vrot.slane %v636_v40, %v3502_v35  ;;  %v661_v59 = vrot.slane %v633_v50, %v3502_v35  ;;  %v637_v60 = vcombine.high %v633_v50, %v633_v50 }
 0x222   :  { %v678_v48 = vadd.f32 %v641_v43, %v549_v46  ;;  %v665_v10 = vrot.slane %v635_v2, %v3502_v35 }
 0x223   :  { %v694_v49 = vadd.f32 %v2122_v42, %v679_v45  ;;  %v669_v7 = vrot.slane %v637_v60, %v3502_v35 }
 0x224   :  { %v693_v51 = vadd.f32 %v2122_v42, %v678_v48  ;;  %v2296_v52 = vpop.f32.mrb[4].mxu1 }
 0x225   :  { %2572 = vtanh.f32 %v694_v49  ;;  %v681_v55 = vadd.f32 %v2296_v52, %v653_v47  ;;  %v559_v56 = vpop.f32.mrb[5].mxu1 }
 0x226   :  { %2574 = vtanh.f32 %v693_v51  ;;  %v680_v57 = vadd.f32 %v649_v53, %v559_v56  ;;  %v3521_v53 = vand.u32 127, %v283_v23 }
 0x227   :  { %v696_v58 = vadd.f32 %v2122_v42, %v681_v55 }
 0x228   :  { %v695_v61 = vadd.f32 %v2122_v42, %v680_v57  ;;  %v2299_v62 = vpop.f32.mrb[6].mxu1  ;;  %v3527_v55 = vsub.s32 %v3521_v53, %v3498_v27 }
 0x229   :  { %2576 = vtanh.f32 %v696_v58  ;;  %v683_v3 = vadd.f32 %v2299_v62, %v661_v59  ;;  %v569_v4 = vpop.f32.mrb[7].mxu1 }
 0x22a   :  { %2578 = vtanh.f32 %v695_v61  ;;  %v682_v5 = vadd.f32 %v657_v63, %v569_v4 }
 0x22b   :  { %v698_v6 = vadd.f32 %v2122_v42, %v683_v3 }
 0x22c   :  { %v697_v8 = vadd.f32 %v2122_v42, %v682_v5  ;;  %v2302_v9 = vpop.f32.mrb[8].mxu1 }
 0x22d   :  { %2580 = vtanh.f32 %v698_v6  ;;  %v685_v11 = vadd.f32 %v2302_v9, %v669_v7  ;;  %v579_v12 = vpop.f32.mrb[9].mxu1 }
 0x22e   :  { %2582 = vtanh.f32 %v697_v8  ;;  %v684_v24 = vadd.f32 %v665_v10, %v579_v12 }
 0x22f   :  { %v2573_v25 = vpop.eup %2572  ;;  %v700_v26 = vadd.f32 %v2122_v42, %v685_v11 }
 0x230   :  { %v2575_v28 = vpop.eup %2574  ;;  %v699_v29 = vadd.f32 %v2122_v42, %v684_v24  ;;  %v717_v30 = vmul.f32 %v2573_v25, %v2123_v14 }
 0x231   :  { %2584 = vtanh.f32 %v700_v26  ;;  %v716_v32 = vmul.f32 %v2575_v28, %v2123_v14  ;;  %v282_v26 = vld [vmem:[%s3954_s4] sm:$0xff]  ;;  %v3032_v28 = vmov 0  }
 0x232   :  { %2586 = vtanh.f32 %v699_v29  ;;  %v727_v31 = vsel %vm381_vm1, %v717_v30, 0.0  ;;  %2570 = vset.pattern.permute.xlu1 %v3032_v28  ;;  %2571 = vset.pattern.permute.xlu0 %v3032_v28  ;;  %v291_v29 = vld [vmem:[%s3955_s27] sm:$0xff]  ;;  %v292_v30 = vld [vmem:[%s3955_s27 + $0x8] sm:$0xff] }
 0x233   :  { %v2577_v33 = vpop.eup %2576  ;;  %728 = vadd.xlane.f32.xlu0 %v727_v31  ;;  %v724_v37 = vsel %vm381_vm1, %v716_v32, 0.0  ;;  %v293_v31 = vld [vmem:[%s3955_s27 + $0x10] sm:$0xff]  ;;  %v2436_v32 = vpack.c.bf16 %v292_v30, %v291_v29 }
 0x234   :  { %v2579_v34 = vpop.eup %2578  ;;  %v719_v36 = vmul.f32 %v2577_v33, %v2123_v14  ;;  %v294_v33 = vld [vmem:[%s3955_s27 + $0x18] sm:$0xff] }
 0x235   :  { %v718_v39 = vmul.f32 %v2579_v34, %v2123_v14  ;;  %2437 = vmatpush3.bf16.msra.mxu0 %v2436_v32  ;;  %v2439_v34 = vpack.c.bf16 %v294_v33, %v293_v31  ;;  %v838_v31 = vsub.s32 7, %v3498_v27 }
 0x236   :  { %v733_v38 = vsel %vm381_vm1, %v719_v36, 0.0  ;;  %2438 = vmatprep.subr.bf16.mxu0 %v3028_v0  ;;  %v295_v36 = vld [vmem:[%s3955_s27 + $0x20] sm:$0xff] }
 0x237   :  { %v2581_v40 = vpop.eup %2580  ;;  %725 = vadd.xlane.f32.xlu0 %v724_v37  ;;  %734 = vadd.xlane.f32.xlu1 %v733_v38  ;;  %v730_v43 = vsel %vm381_vm1, %v718_v39, 0.0  ;;  %v296_v37 = vld [vmem:[%s3955_s27 + $0x28] sm:$0xff]  ;;  %v297_v39 = vld [vmem:[%s3955_s27 + $0x30] sm:$0xff] }
 0x238   :  { %v2583_v41 = vpop.eup %2582  ;;  %v721_v44 = vmul.f32 %v2581_v40, %v2123_v14  ;;  %v2442_v38 = vpack.c.bf16 %v296_v37, %v295_v36  ;;  %v298_v40 = vld [vmem:[%s3955_s27 + $0x38] sm:$0xff]  ;;  %v3033_v37 = vmov 1.0  }
 0x239   :  { %v720_v42 = vmul.f32 %v2583_v41, %v2123_v14  ;;  %2440 = vmatpush3.bf16.msra.mxu0 %v2439_v34  ;;  %v2445_v41 = vpack.c.bf16 %v298_v40, %v297_v39 }
 0x23a   :  { %v739_v49 = vsel %vm381_vm1, %v721_v44, 0.0  ;;  %2441 = vmatprep.subr.bf16.mxu0 %v3028_v0 }
 0x23b   :  { %v2585_v45 = vpop.eup %2584  ;;  %731 = vadd.xlane.f32.xlu1 %v730_v43  ;;  %v736_v46 = vsel %vm381_vm1, %v720_v42, 0.0  ;;  %v299_v42 = vld [vmem:[%s3955_s27 + $0x40] sm:$0xff]  ;;  %v300_v43 = vld [vmem:[%s3955_s27 + $0x48] sm:$0xff] }
 0x23c   :  { %v2587_v47 = vpop.eup %2586  ;;  %737 = vadd.xlane.f32.xlu0 %v736_v46  ;;  %v723_v50 = vmul.f32 %v2585_v45, %v2123_v14  ;;  %v2448_v44 = vpack.c.bf16 %v300_v43, %v299_v42  ;;  %v301_v45 = vld [vmem:[%s3955_s27 + $0x50] sm:$0xff]  ;;  %v302_v46 = vld [vmem:[%s3955_s27 + $0x58] sm:$0xff] }
 0x23d   :  { %v722_v48 = vmul.f32 %v2587_v47, %v2123_v14  ;;  %2443 = vmatpush3.bf16.msra.mxu0 %v2442_v38  ;;  %v2451_v47 = vpack.c.bf16 %v302_v46, %v301_v45 }
 0x23e   :  { %v745_v52 = vsel %vm381_vm1, %v723_v50, 0.0  ;;  %2444 = vmatprep.subr.bf16.mxu0 %v3028_v0 }
 0x23f   :  { %740 = vadd.xlane.f32.xlu1 %v739_v49  ;;  %v742_v51 = vsel %vm381_vm1, %v722_v48, 0.0  ;;  %v303_v48 = vld [vmem:[%s3955_s27 + $0x60] sm:$0xff]  ;;  %v304_v49 = vld [vmem:[%s3955_s27 + $0x68] sm:$0xff] }
 0x240   :  { %743 = vadd.xlane.f32.xlu0 %v742_v51  ;;  %v2454_v50 = vpack.c.bf16 %v304_v49, %v303_v48  ;;  %v305_v51 = vld [vmem:[%s3955_s27 + $0x70] sm:$0xff] }
 0x241   :  { %2446 = vmatpush3.bf16.msra.mxu0 %v2445_v41 }
 0x242   :  { %2447 = vmatprep.subr.bf16.mxu0 %v3028_v0 }
 0x243   :  { %746 = vadd.xlane.f32.xlu1 %v745_v52  ;;  %v306_v52 = vld [vmem:[%s3955_s27 + $0x78] sm:$0xff] }
 0x245   :  { %2449 = vmatpush3.bf16.msra.mxu0 %v2448_v44 }
 0x246   :  { %2450 = vmatprep.subr.bf16.mxu0 %v3028_v0 }
 0x249   :  { %2452 = vmatpush3.bf16.msra.mxu0 %v2451_v47 }
 0x24a   :  { %2453 = vmatprep.subr.bf16.mxu0 %v3028_v0 }
 0x24d   :  { %2455 = vmatpush3.bf16.msra.mxu0 %v2454_v50 }
 0x24e   :  { %2456 = vmatprep.subr.bf16.mxu0 %v3028_v0 }
 0x254   :  { %286 = vperm.xlu1 %2570, %v282_v26  }
 0x2c0   :  { %v3523_v54 = vpop.xlane.xlu0 %728 }
 0x2c1   :  { %v763_v59 = vrot.slane %v3523_v54, %v3527_v55 }
 0x2c4   :  { %v3529_v56 = vpop.xlane.xlu0 %725  ;;  %v3531_v57 = vpop.xlane.xlu1 %734 }
 0x2c5   :  { %v759_v58 = vrot.slane %v3529_v56, %v3527_v55  ;;  %v771_v63 = vrot.slane %v3531_v57, %v3527_v55 }
 0x2c7   :  { %v789_v62 = vsel %vm788_vm2, %v763_v59, %v759_v58  ;;  %v2457_v58 = vpack.c.bf16 %v306_v52, %v305_v51  ;;  %v814_v59 = vsub.s32 1, %v3498_v27 }
 0x2c8   :  { %v3537_v23 = vpop.xlane.xlu1 %731 }
 0x2c9   :  { %v767_v60 = vrot.slane %v3537_v23, %v3527_v55  ;;  %v3541_v61 = vpop.xlane.xlu0 %737  ;;  %2458 = vmatpush3.bf16.msra.mxu0 %v2457_v58 }
 0x2ca   :  { %v775_v2 = vrot.slane %v3541_v61, %v3527_v55  ;;  %2479 = vmatprep.subr.bf16.mxu0 %v3028_v0 }
 0x2cb   :  { %v791_v3 = vsel %vm790_vm3, %v767_v60, %v789_v62  ;;  %v818_v60 = vsub.s32 2, %v3498_v27  ;;  %v822_v62 = vsub.s32 3, %v3498_v27 }
 0x2cc   :  { %v793_v4 = vsel %vm792_vm4, %v771_v63, %v791_v3  ;;  %v3550_v5 = vpop.xlane.xlu1 %740 }
 0x2cd   :  { %v795_v6 = vsel %vm794_vm5, %v775_v2, %v793_v4  ;;  %v779_v7 = vrot.slane %v3550_v5, %v3527_v55  ;;  %v3555_v8 = vpop.xlane.xlu0 %743 }
 0x2ce   :  { %v783_v9 = vrot.slane %v3555_v8, %v3527_v55 }
 0x2cf   :  { %v797_v10 = vsel %vm796_vm6, %v779_v7, %v795_v6 }
 0x2d0   :  { %v3560_v11 = vpop.xlane.xlu1 %746  ;;  %v799_v14 = vsel %vm798_vm7, %v783_v9, %v797_v10  ;;  %v826_v9 = vsub.s32 4, %v3498_v27 }
 0x2d1   :  { %v787_v12 = vrot.slane %v3560_v11, %v3527_v55 }
 0x2d3   :  { %v801_v24 = vsel %vm800_vm8, %v787_v12, %v799_v14 }
 0x2d4   :  { %v804_v25 = vsel %vm803_vm9, %v801_v24, -inf  ;;  %v287_v33 = vpop.permute.xlu1 %286 }
 0x2d5   :  { %805 = vmax.xlane.f32.xlu0 %v804_v25  ;;  %v830_v25 = vsub.s32 5, %v3498_v27  ;;  %vm288_vm10 = vcmp.eq.s32.totalorder %v3521_v53, %v287_v33  ;;  %v1102_v33 = vld [vmem:[%s3956_s8 + $0x8] sm:$0xff] }
 0x2d6   :  { %2270 = vmatmul.mubr.msk.f32.vlgmr.msra.gmra.mrb[0].mxu0 %vm288_vm10, %v3033_v37 }
 0x2d7   :  { %2322 = vmatprep.mubr.msk.f32.mxu0 %vm3029_vm0, %v3030_v1 }
 0x362   :  { %v806_v63 = vpop.xlane.xlu0 %805 }
 0x363   :  { %v811_v2 = vrot.slane %v806_v63, %v3502_v35  ;;  %v815_v3 = vrot.slane %v806_v63, %v814_v59  ;;  %v819_v4 = vrot.slane %v806_v63, %v818_v60  ;;  %v823_v10 = vrot.slane %v806_v63, %v822_v62 }
 0x364   :  { %v827_v26 = vrot.slane %v806_v63, %v826_v9  ;;  %v831_v29 = vrot.slane %v806_v63, %v830_v25 }
 0x365   :  { %v848_v6 = vsub.f32 %v3529_v56, %v811_v2  ;;  %v849_v7 = vsub.f32 %v3523_v54, %v815_v3  ;;  %v850_v12 = vsub.f32 %v3537_v23, %v819_v4  ;;  %v851_v28 = vsub.f32 %v3531_v57, %v823_v10 }
 0x366   :  { %v834_v54 = vsub.s32 6, %v3498_v27  ;;  %v852_v30 = vsub.f32 %v3541_v61, %v827_v26  ;;  %v853_v34 = vsub.f32 %v3550_v5, %v831_v29  ;;  %v839_v61 = vrot.slane %v806_v63, %v838_v31 }
 0x367   :  { %v856_v14 = vmul.f32 1.442695, %v848_v6  ;;  %v858_v24 = vmul.f32 1.442695, %v849_v7  ;;  %v860_v56 = vmul.f32 1.442695, %v850_v12 }
 0x368   :  { %v862_v23 = vmul.f32 1.442695, %v851_v28  ;;  %v835_v32 = vrot.slane %v806_v63, %v834_v54  ;;  %v864_v57 = vmul.f32 1.442695, %v852_v30  ;;  %v866_v53 = vmul.f32 1.442695, %v853_v34 }
 0x369   :  { %2588 = vpow2.f32 %v856_v14  ;;  %v855_v40 = vsub.f32 %v3560_v11, %v839_v61 }
 0x36a   :  { %2590 = vpow2.f32 %v858_v24  ;;  %v854_v5 = vsub.f32 %v3555_v8, %v835_v32  ;;  %v1101_v32 = vld [vmem:[%s3956_s8] sm:$0xff] }
 0x36b   :  { %2592 = vpow2.f32 %v860_v56  ;;  %v870_v43 = vmul.f32 1.442695, %v855_v40  ;;  %v2480_v34 = vpack.c.bf16 %v1102_v33, %v1101_v32 }
 0x36c   :  { %2594 = vpow2.f32 %v862_v23  ;;  %v868_v41 = vmul.f32 1.442695, %v854_v5 }
 0x36d   :  { %2596 = vpow2.f32 %v864_v57  ;;  %2481 = vmatpush3.bf16.msra.mxu0 %v2480_v34  ;;  %v1104_v57 = vld [vmem:[%s3956_s8 + $0x18] sm:$0xff] }
 0x36e   :  { %2598 = vpow2.f32 %v866_v53  ;;  %2482 = vmatprep.subr.bf16.mxu0 %v3028_v0 }
 0x36f   :  { %2600 = vpow2.f32 %v868_v41 }
 0x370   :  { %2602 = vpow2.f32 %v870_v43 }
 0x373   :  { %v3653_v36 = vpop.eup %2588 }
 0x374   :  { %v3655_v38 = vpop.eup %2590  ;;  %881 = vperm.xlu0 %2571, %v3653_v36  }
 0x375   :  { %884 = vperm.xlu1 %2570, %v3655_v38   ;;  %v3664_v39 = vpop.eup %2592 }
 0x376   :  { %v3668_v42 = vpop.eup %2594 }
 0x377   :  { %v3671_v44 = vpop.eup %2596 }
 0x378   :  { %v3674_v8 = vpop.eup %2598 }
 0x379   :  { %887 = vperm.xlu1 %2570, %v3664_v39   ;;  %v3677_v45 = vpop.eup %2600 }
 0x37a   :  { %v3680_v11 = vpop.eup %2602 }
 0x37d   :  { %890 = vperm.xlu1 %2570, %v3668_v42  }
 0x381   :  { %893 = vperm.xlu1 %2570, %v3671_v44  }
 0x385   :  { %896 = vperm.xlu1 %2570, %v3674_v8  }
 0x389   :  { %899 = vperm.xlu1 %2570, %v3677_v45  }
 0x38d   :  { %902 = vperm.xlu1 %2570, %v3680_v11  }
 0x3a9   :  { %v3713_v61 = vpop.f32.mrb[0].mxu0 }
 0x3aa   :  { %v2271_v5 = vpop.f32.mrb[1].mxu0 }
 0x3f3   :  { %v882_v50 = vpop.permute.xlu0 %881 }
 0x3f4   :  { %v885_v46 = vpop.permute.xlu1 %884  ;;  %v907_v58 = vrot.slane %v882_v50, %v3527_v55 }
 0x3f5   :  { %v911_v52 = vrot.slane %v885_v46, %v3527_v55 }
 0x3f7   :  { %v936_v6 = vsel %vm788_vm2, %v911_v52, %v907_v58  ;;  %v1362_v52 = vld [vmem:[#allocation11] sm:$0xff]  ;;  %v1363_v58 = vld [vmem:[#allocation11 + $0x8] sm:$0xff] }
 0x3f8   :  { %v888_v47 = vpop.permute.xlu1 %887 }
 0x3f9   :  { %v915_v63 = vrot.slane %v888_v47, %v3527_v55 }
 0x3fb   :  { %v937_v10 = vsel %vm790_vm3, %v915_v63, %v936_v6  ;;  %v1107_v63 = vld [vmem:[#allocation10 + $0x10] sm:$0xff] }
 0x3fc   :  { %v891_v48 = vpop.permute.xlu1 %890 }
 0x3fd   :  { %v919_v2 = vrot.slane %v891_v48, %v3527_v55 }
 0x3ff   :  { %v938_v14 = vsel %vm792_vm4, %v919_v2, %v937_v10  ;;  %v2492_v2 = vpack.c.bf16 %v1363_v58, %v1362_v52 }
 0x400   :  { %v894_v49 = vpop.permute.xlu1 %893 }
 0x401   :  { %v923_v3 = vrot.slane %v894_v49, %v3527_v55 }
 0x403   :  { %v939_v24 = vsel %vm794_vm5, %v923_v3, %v938_v14  ;;  %v1364_v3 = vld [vmem:[#allocation11 + $0x10] sm:$0xff] }
 0x404   :  { %v897_v51 = vpop.permute.xlu1 %896 }
 0x405   :  { %v927_v7 = vrot.slane %v897_v51, %v3527_v55  ;;  %v1106_v51 = vld [vmem:[#allocation10 + $0x8] sm:$0xff] }
 0x407   :  { %v940_v28 = vsel %vm796_vm6, %v927_v7, %v939_v24 }
 0x408   :  { %v900_v4 = vpop.permute.xlu1 %899 }
 0x409   :  { %v931_v12 = vrot.slane %v900_v4, %v3527_v55  ;;  %v1365_v4 = vld [vmem:[#allocation11 + $0x18] sm:$0xff] }
 0x40a   :  { %v2495_v27 = vpack.c.bf16 %v1365_v4, %v1364_v3 }
 0x40b   :  { %v941_v29 = vsel %vm798_vm7, %v931_v12, %v940_v28 }
 0x40c   :  { %v903_v26 = vpop.permute.xlu1 %902 }
 0x40d   :  { %v935_v56 = vrot.slane %v903_v26, %v3527_v55  ;;  %v1103_v55 = vld [vmem:[%s3956_s8 + $0x10] sm:$0xff] }
 0x40e   :  { %v2483_v37 = vpack.c.bf16 %v1104_v57, %v1103_v55 }
 0x40f   :  { %v942_v30 = vsel %vm800_vm8, %v935_v56, %v941_v29 }
 0x410   :  { %v944_v23 = vsel %vm803_vm9, %v942_v30, 0.0  ;;  %2484 = vmatpush3.bf16.msra.mxu0 %v2483_v37 }
 0x411   :  { %945 = vadd.xlane.f32.xlu1 %v944_v23  ;;  %2491 = vmatprep.subr.bf16.mxu0 %v3028_v0 }
 0x413   :  { %2323 = vmatmul.mubr.msk.f32.vlgmr.msra.gmra.mrb[2].mxu0 %vm381_vm1, %v3713_v61 }
 0x414   :  { %2344 = vmatprep.mubr.msk.f32.mxu0 %vm3029_vm0, %v3030_v1  ;;  %2493 = vmatpush3.bf16.msra.mxu0 %v2492_v2 }
 0x415   :  { %2494 = vmatprep.subr.bf16.mxu0 %v3028_v0 }
 0x418   :  { %2496 = vmatpush3.bf16.msra.mxu0 %v2495_v27 }
 0x419   :  { %2503 = vmatprep.subr.bf16.mxu0 %v3028_v0 }
 0x49e   :  { %v946_v53 = vpop.xlane.xlu1 %945 }
 0x49f   :  { %2604 = vrcp.f32 %v946_v53 }
 0x4a9   :  { %v2605_v40 = vpop.eup %2604 }
 0x4aa   :  { %v952_v41 = vrot.slane %v2605_v40, %v3502_v35  ;;  %v956_v46 = vrot.slane %v2605_v40, %v814_v59  ;;  %v960_v48 = vrot.slane %v2605_v40, %v818_v60  ;;  %v964_v50 = vrot.slane %v2605_v40, %v822_v62 }
 0x4ac   :  { %v989_v43 = vmul.f32 %v3653_v36, %v952_v41  ;;  %v990_v47 = vmul.f32 %v3655_v38, %v956_v46  ;;  %v991_v49 = vmul.f32 %v3664_v39, %v960_v48  ;;  %v992_v35 = vmul.f32 %v3668_v42, %v964_v50 }
 0x4ad   :  { %v968_v36 = vrot.slane %v2605_v40, %v826_v9  ;;  %v972_v38 = vrot.slane %v2605_v40, %v830_v25  ;;  %v976_v39 = vrot.slane %v2605_v40, %v834_v54  ;;  %v980_v42 = vrot.slane %v2605_v40, %v838_v31 }
 0x4ae   :  { %999 = vperm.xlu0 %2571, %v989_v43  }
 0x4af   :  { %v993_v59 = vmul.f32 %v3671_v44, %v968_v36  ;;  %v994_v60 = vmul.f32 %v3674_v8, %v972_v38  ;;  %v995_v62 = vmul.f32 %v3677_v45, %v976_v39  ;;  %v996_v9 = vmul.f32 %v3680_v11, %v980_v42  ;;  %v1105_v44 = vld [vmem:[#allocation10] sm:$0xff]  ;;  %v1108_v8 = vld [vmem:[#allocation10 + $0x18] sm:$0xff] }
 0x4b0   :  { %v2474_v25 = vpack.c.bf16 %v1106_v51, %v1105_v44  ;;  %v2477_v54 = vpack.c.bf16 %v1108_v8, %v1107_v63 }
 0x4b2   :  { %1004 = vperm.xlu0 %2571, %v990_v47   ;;  %2475 = vmatpush3.bf16.msra.mxu1 %v2474_v25 }
 0x4b3   :  { %2476 = vmatprep.subr.bf16.mxu1 %v3028_v0 }
 0x4b6   :  { %1009 = vperm.xlu0 %2571, %v991_v49   ;;  %2478 = vmatpush3.bf16.msra.mxu1 %v2477_v54 }
 0x4b7   :  { %2485 = vmatprep.subr.bf16.mxu1 %v3028_v0 }
 0x4ba   :  { %1014 = vperm.xlu0 %2571, %v992_v35  }
 0x4be   :  { %1019 = vperm.xlu0 %2571, %v993_v59  }
 0x4c2   :  { %1024 = vperm.xlu0 %2571, %v994_v60  }
 0x4c6   :  { %1029 = vperm.xlu0 %2571, %v995_v62  }
 0x4ca   :  { %1034 = vperm.xlu0 %2571, %v996_v9  }
 0x4e6   :  { %v3746_v31 = vpop.f32.mrb[2].mxu0 }
 0x4e7   :  { %v2324_v45 = vpop.f32.mrb[3].mxu0 }
 0x52d   :  { %v1000_v11 = vpop.permute.xlu0 %999 }
 0x52e   :  { %v1037_v12 = vmul.f32 %v1000_v11, %v3439_v15 }
 0x530   :  { %v1045_v56 = vsel %vm381_vm1, %v1037_v12, 0.0 }
 0x531   :  { %v1005_v6 = vpop.permute.xlu0 %1004  ;;  %v1046_v33 = vrot.slane %v1045_v56, 4 }
 0x532   :  { %v1038_v7 = vmul.f32 %v1005_v6, %v3448_v16 }
 0x533   :  { %v1047_v37 = vadd.f32 %v1046_v33, %v1045_v56  ;;  %v1270_v33 = vld [vmem:[#allocation14 + $0x8] sm:$0xff] }
 0x534   :  { %v1052_v24 = vsel %vm381_vm1, %v1038_v7, 0.0 }
 0x535   :  { %v1010_v10 = vpop.permute.xlu0 %1009  ;;  %v1053_v30 = vrot.slane %v1052_v24, 4  ;;  %v1048_v48 = vrot.slane %v1047_v37, 2 }
 0x536   :  { %v1039_v14 = vmul.f32 %v1010_v10, %v3453_v17 }
 0x537   :  { %v1054_v55 = vadd.f32 %v1053_v30, %v1052_v24  ;;  %v1049_v62 = vadd.f32 %v1048_v48, %v1047_v37  ;;  %v1269_v30 = vld [vmem:[#allocation14] sm:$0xff] }
 0x538   :  { %v1059_v26 = vsel %vm381_vm1, %v1039_v14, 0.0 }
 0x539   :  { %v1015_v28 = vpop.permute.xlu0 %1014  ;;  %v1060_v23 = vrot.slane %v1059_v26, 4 }
 0x53a   :  { %v1040_v29 = vmul.f32 %v1015_v28, %v3463_v18  ;;  %v1055_v18 = vrot.slane %v1054_v55, 2 }
 0x53b   :  { %v1061_v17 = vadd.f32 %v1060_v23, %v1059_v26 }
 0x53c   :  { %v1066_v32 = vsel %vm381_vm1, %v1040_v29, 0.0  ;;  %v1056_v59 = vadd.f32 %v1055_v18, %v1054_v55  ;;  %v1272_v18 = vld [vmem:[#allocation14 + $0x18] sm:$0xff] }
 0x53d   :  { %v1067_v16 = vrot.slane %v1066_v32, 4  ;;  %v1020_v34 = vpop.permute.xlu0 %1019  ;;  %v1062_v46 = vrot.slane %v1061_v17, 2 }
 0x53e   :  { %v1041_v15 = vmul.f32 %v1020_v34, %v3468_v19  ;;  %v1057_v25 = vrot.slane %v1056_v59, 1  ;;  %v1507_v34 = vld [vmem:[%s3911_s15 + $0x8] sm:$0xff] }
 0x53f   :  { %v1068_v5 = vadd.f32 %v1067_v16, %v1066_v32  ;;  %v1063_v60 = vadd.f32 %v1062_v46, %v1061_v17  ;;  %v1506_v16 = vld [vmem:[%s3911_s15] sm:$0xff]  ;;  %v1509_v46 = vld [vmem:[%s3911_s15 + $0x18] sm:$0xff] }
 0x540   :  { %v1073_v57 = vsel %vm381_vm1, %v1041_v15, 0.0  ;;  %v1058_v45 = vadd.f32 %v1057_v25, %v1056_v59  ;;  %v1844_v25 = vld [vmem:[#allocation25 + $0x8] sm:$0xff] }
 0x541   :  { %v1074_v53 = vrot.slane %v1073_v57, 4  ;;  %v1025_v40 = vpop.permute.xlu0 %1024  ;;  %v1069_v49 = vrot.slane %v1068_v5, 2  ;;  %v1064_v8 = vrot.slane %v1063_v60, 1 }
 0x542   :  { %v1042_v41 = vmul.f32 %v1025_v40, %v3477_v20  ;;  %v1271_v40 = vld [vmem:[#allocation14 + $0x10] sm:$0xff] }
 0x543   :  { %v1075_v43 = vadd.f32 %v1074_v53, %v1073_v57  ;;  %v1070_v42 = vadd.f32 %v1069_v49, %v1068_v5  ;;  %v1065_v10 = vadd.f32 %v1064_v8, %v1063_v60  ;;  %v2486_v5 = vpack.c.bf16 %v1270_v33, %v1269_v30  ;;  %v1360_v60 = vld [vmem:[%s3957_s6 + $0x10] sm:$0xff] }
 0x544   :  { %v1080_v47 = vsel %vm381_vm1, %v1042_v41, 0.0  ;;  %v2504_v53 = vpack.c.bf16 %v1507_v34, %v1506_v16  ;;  %v2489_v48 = vpack.c.bf16 %v1272_v18, %v1271_v40  ;;  %v1598_v8 = vld [vmem:[#allocation16 + $0x18] sm:$0xff] }
 0x545   :  { %v1081_v50 = vrot.slane %v1080_v47, 4  ;;  %v1030_v35 = vpop.permute.xlu0 %1029  ;;  %v1076_v19 = vrot.slane %v1075_v43, 2  ;;  %v1071_v3 = vrot.slane %v1070_v42, 1  ;;  %v1841_v30 = vld [vmem:[#allocation23 + $0x10] sm:$0xff] }
 0x546   :  { %v1043_v36 = vmul.f32 %v1030_v35, %v3482_v21  ;;  %v1050_v21 = vrot.slane %v1049_v62, 1  ;;  %v1359_v35 = vld [vmem:[%s3957_s6 + $0x8] sm:$0xff] }
 0x547   :  { %v1082_v38 = vadd.f32 %v1081_v50, %v1080_v47  ;;  %v1077_v51 = vadd.f32 %v1076_v19, %v1075_v43  ;;  %v1072_v14 = vadd.f32 %v1071_v3, %v1070_v42  ;;  %v1508_v43 = vld [vmem:[%s3911_s15 + $0x10] sm:$0xff]  ;;  %v1358_v50 = vld [vmem:[%s3957_s6] sm:$0xff] }
 0x548   :  { %v1087_v39 = vsel %vm381_vm1, %v1043_v36, 0.0  ;;  %v1051_v12 = vadd.f32 %v1050_v21, %v1049_v62  ;;  %v2507_v49 = vpack.c.bf16 %v1509_v46, %v1508_v43  ;;  %v1680_v19 = vld [vmem:[#allocation13] sm:$0xff]  ;;  %v1681_v36 = vld [vmem:[#allocation13 + $0x8] sm:$0xff]  ;;  %v2498_v59 = vpack.c.bf16 %v1359_v35, %v1358_v50  ;;  %v1682_v62 = vld [vmem:[#allocation13 + $0x10] sm:$0xff] }
 0x549   :  { %v1083_v20 = vrot.slane %v1082_v38, 2  ;;  %v1088_v9 = vrot.slane %v1087_v39, 4  ;;  %v1035_v44 = vpop.permute.xlu0 %1034  ;;  %v1078_v27 = vrot.slane %v1077_v51, 1  ;;  %v1683_v42 = vld [vmem:[#allocation13 + $0x18] sm:$0xff]  ;;  %v1846_v21 = vld [vmem:[#allocation25 + $0x18] sm:$0xff] }
 0x54a   :  { %v1044_v52 = vmul.f32 %v1035_v44, %v3491_v22  ;;  %v1117_v28 = vsel %vm788_vm2, %v1058_v45, %v1051_v12  ;;  %v1595_v44 = vld [vmem:[#allocation16] sm:$0xff]  ;;  %v1990_v45 = vld [vmem:[%s3919_s23] sm:$0xff]  ;;  %v1679_v12 = vld [vmem:[#allocation8 + $0x18] sm:$0xff] }
 0x54b   :  { %v1084_v58 = vadd.f32 %v1083_v20, %v1082_v38  ;;  %v1089_v63 = vadd.f32 %v1088_v9, %v1087_v39  ;;  %v1079_v26 = vadd.f32 %v1078_v27, %v1077_v51  ;;  %v1118_v23 = vsel %vm790_vm3, %v1065_v10, %v1117_v28  ;;  %v1361_v39 = vld [vmem:[%s3957_s6 + $0x18] sm:$0xff]  ;;  %v1678_v10 = vld [vmem:[#allocation8 + $0x10] sm:$0xff] }
 0x54c   :  { %v1094_v2 = vsel %vm381_vm1, %v1044_v52, 0.0  ;;  %v1119_v15 = vsel %vm792_vm4, %v1072_v14, %v1118_v23  ;;  %v2516_v38 = vpack.c.bf16 %v1681_v36, %v1680_v19  ;;  %v2501_v20 = vpack.c.bf16 %v1361_v39, %v1360_v60  ;;  %v1596_v51 = vld [vmem:[#allocation16 + $0x8] sm:$0xff]  ;;  %v1992_v14 = vld [vmem:[%s3919_s23 + $0x10] sm:$0xff] }
 0x54d   :  { %v1090_v54 = vrot.slane %v1089_v63, 2  ;;  %v1095_v4 = vrot.slane %v1094_v2, 4  ;;  %v1085_v11 = vrot.slane %v1084_v58, 1  ;;  %v1120_v17 = vsel %vm794_vm5, %v1079_v26, %v1119_v15  ;;  %v1843_v52 = vld [vmem:[#allocation25] sm:$0xff] }
 0x54e   :  { %v2519_v9 = vpack.c.bf16 %v1683_v42, %v1682_v62  ;;  %v1677_v27 = vld [vmem:[#allocation8 + $0x8] sm:$0xff]  ;;  %v2525_v26 = vpack.c.bf16 %v1679_v12, %v1678_v10 }
 0x54f   :  { %v1091_v6 = vadd.f32 %v1090_v54, %v1089_v63  ;;  %v1096_v7 = vadd.f32 %v1095_v4, %v1094_v2  ;;  %v1086_v56 = vadd.f32 %v1085_v11, %v1084_v58  ;;  %v2528_v58 = vpack.c.bf16 %v1844_v25, %v1843_v52  ;;  %v1597_v63 = vld [vmem:[#allocation16 + $0x10] sm:$0xff]  ;;  %v1845_v2 = vld [vmem:[#allocation25 + $0x10] sm:$0xff]  ;;  %v1676_v4 = vld [vmem:[#allocation8] sm:$0xff] }
 0x550   :  { %v2513_v3 = vpack.c.bf16 %v1598_v8, %v1597_v63  ;;  %v2531_v54 = vpack.c.bf16 %v1846_v21, %v1845_v2  ;;  %v1991_v11 = vld [vmem:[%s3919_s23 + $0x8] sm:$0xff]  ;;  %v2138_v25 = vld [vmem:[#allocation20] ss:$0 sm:$0xff] }
 0x551   :  { %v1092_v24 = vrot.slane %v1091_v6, 1  ;;  %v1097_v22 = vrot.slane %v1096_v7, 2  ;;  %v1121_v57 = vsel %vm796_vm6, %v1086_v56, %v1120_v17  ;;  %v1839_v56 = vld [vmem:[#allocation23] sm:$0xff] }
 0x553   :  { %v1098_v29 = vadd.f32 %v1097_v22, %v1096_v7  ;;  %v1093_v32 = vadd.f32 %v1092_v24, %v1091_v6  ;;  %v2522_v6 = vpack.c.bf16 %v1677_v27, %v1676_v4  ;;  %v2540_v7 = vpack.c.bf16 %v1991_v11, %v1990_v45  ;;  %v1993_v24 = vld [vmem:[%s3919_s23 + $0x18] sm:$0xff]  ;;  %v3847_v22 = vld [vmem:[#allocation2] sm:$0xff]  ;;  %s3034_s23 = smov [#allocation27]  }
 0x554   :  { %v2543_v28 = vpack.c.bf16 %v1993_v24, %v1992_v14  ;;  %s2091_s2 = sshll.u32 %s3034_s23, 4  ;;  %s2092_s2 = int_to_ptr.vmem [resolvable:$true] %s2091_s2 }
 0x555   :  { %v1099_v55 = vrot.slane %v1098_v29, 1  ;;  %v1122_v41 = vsel %vm798_vm7, %v1093_v32, %v1121_v57  ;;  %v1842_v32 = vld [vmem:[#allocation23 + $0x18] sm:$0xff]  ;;  %s2947_s11 = scalar_lea.vmem %s2092_s2, 128  ;;  %p2952_p9 = scmp.lt.s32.totalorder %s2092_s2, %s2092_s2 }
 0x556   :  { %v2537_v33 = vpack.c.bf16 %v1842_v32, %v1841_v30  ;;  %v2127_v57 = vld [vmem:[#allocation17] ss:$0 sm:$0xff]  ;;  %p2948_p8 = scmp.ne.s32.totalorder %s2092_s2, %s2947_s11  ;;  %p2953_p10 = scmp.lt.s32.totalorder %s2947_s11, %s2947_s11 }
 0x557   :  { %v1100_v37 = vadd.f32 %v1099_v55, %v1098_v29  ;;  %v1840_v29 = vld [vmem:[#allocation23 + $0x8] sm:$0xff] }
 0x558   :  { %v2534_v23 = vpack.c.bf16 %v1840_v29, %v1839_v56  ;;  %p2954_p11 = por %p2953_p10, %p2952_p9 }
 0x559   :  { %v3783_v47 = vsel %vm800_vm8, %v1100_v37, %v1122_v41 }
 0x55a   :  { %2312 = vmatmul.mubr.msk.f32.vlgmr.msra.gmra.mrb[10].mxu1 %vm381_vm1, %v3783_v47  ;;  %2345 = vmatmul.mubr.msk.f32.vlgmr.msra.gmra.mrb[4].mxu0 %vm381_vm1, %v3783_v47  ;;  %p2955_p12 = pnand %p2954_p11, %p2948_p8 }
 0x55b   :  { %2487 = vmatpush3.bf16.msra.mxu1 %v2486_v5  ;;  %2505 = vmatpush3.bf16.msra.mxu0 %v2504_v53 }
 0x55c   :  { %2488 = vmatprep.subr.bf16.mxu1 %v3028_v0  ;;  %2506 = vmatprep.subr.bf16.mxu0 %v3028_v0 }
 0x55d   :  { %2333 = vmatprep.mubr.msk.f32.mxu1 %vm3029_vm0, %v3030_v1  ;;  %2366 = vmatprep.mubr.msk.f32.mxu0 %vm3029_vm0, %v3030_v1 }
 0x55f   :  { %2490 = vmatpush3.bf16.msra.mxu1 %v2489_v48  ;;  %2508 = vmatpush3.bf16.msra.mxu0 %v2507_v49  ;;  %v2132_v48 = vld [vmem:[#allocation19] ss:$0 sm:$0xff] }
 0x560   :  { %2497 = vmatprep.subr.bf16.mxu1 %v3028_v0  ;;  %2515 = vmatprep.subr.bf16.mxu0 %v3028_v0 }
 0x562   :  { %2334 = vmatmul.mubr.msk.f32.vlgmr.msra.gmra.mrb[12].mxu1 %vm381_vm1, %v3434_v13  ;;  %2367 = vmatmul.mubr.msk.f32.vlgmr.msra.gmra.mrb[6].mxu0 %vm381_vm1, %v3434_v13  ;;  %v2510_v13 = vpack.c.bf16 %v1596_v51, %v1595_v44  ;;  %v2134_v44 = vld [vmem:[#allocation22] ss:$0 sm:$0xff] }
 0x563   :  { %2499 = vmatpush3.bf16.msra.mxu1 %v2498_v59  ;;  %2517 = vmatpush3.bf16.msra.mxu0 %v2516_v38 }
 0x564   :  { %2500 = vmatprep.subr.bf16.mxu1 %v3028_v0  ;;  %2518 = vmatprep.subr.bf16.mxu0 %v3028_v0 }
 0x565   :  { %2355 = vmatprep.mubr.msk.f32.mxu1 %vm3029_vm0, %v3030_v1  ;;  %2388 = vmatprep.mubr.msk.f32.mxu0 %vm3029_vm0, %v3030_v1 }
 0x567   :  { %2502 = vmatpush3.bf16.msra.mxu1 %v2501_v20  ;;  %2520 = vmatpush3.bf16.msra.mxu0 %v2519_v9 }
 0x568   :  { %2509 = vmatprep.subr.bf16.mxu1 %v3028_v0  ;;  %2527 = vmatprep.subr.bf16.mxu0 %v3028_v0 }
 0x56a   :  { %2356 = vmatmul.mubr.msk.f32.vlgmr.msra.gmra.mrb[14].mxu1 %vm381_vm1, %v3713_v61  ;;  %2389 = vmatmul.mubr.msk.f32.vlgmr.msra.gmra.mrb[8].mxu0 %vm381_vm1, %v3783_v47 }
 0x56b   :  { %2511 = vmatpush3.bf16.msra.mxu1 %v2510_v13  ;;  %2529 = vmatpush3.bf16.msra.mxu0 %v2528_v58 }
 0x56c   :  { %2512 = vmatprep.subr.bf16.mxu1 %v3028_v0  ;;  %2530 = vmatprep.subr.bf16.mxu0 %v3028_v0 }
 0x56d   :  { %2410 = vmatprep.mubr.msk.f32.mxu0 %vm3029_vm0, %v3030_v1  ;;  %2377 = vmatprep.mubr.msk.f32.mxu1 %vm3029_vm0, %v3030_v1 }
 0x56f   :  { %2514 = vmatpush3.bf16.msra.mxu1 %v2513_v3  ;;  %2532 = vmatpush3.bf16.msra.mxu0 %v2531_v54 }
 0x570   :  { %2521 = vmatprep.subr.bf16.mxu1 %v3028_v0  ;;  %2539 = vmatprep.subr.bf16.mxu0 %v3028_v0 }
 0x572   :  { %2411 = vmatmul.mubr.msk.f32.vlgmr.msra.gmra.mrb[10].mxu0 %vm381_vm1, %v3783_v47  ;;  %2378 = vmatmul.mubr.msk.f32.vlgmr.msra.gmra.mrb[16].mxu1 %vm381_vm1, %v3847_v22 }
 0x573   :  { %2523 = vmatpush3.bf16.msra.mxu1 %v2522_v6  ;;  %2541 = vmatpush3.bf16.msra.mxu0 %v2540_v7 }
 0x574   :  { %2524 = vmatprep.subr.bf16.mxu1 %v3028_v0  ;;  %2542 = vmatprep.subr.bf16.mxu0 %v3028_v0 }
 0x575   :  { %2399 = vmatprep.mubr.msk.f32.mxu1 %vm3029_vm0, %v3030_v1  ;;  %2432 = vmatprep.mubr.msk.f32.mxu0 %vm3029_vm0, %v3030_v1 }
 0x577   :  { %2526 = vmatpush3.bf16.msra.mxu1 %v2525_v26  ;;  %2544 = vmatpush3.bf16.msra.mxu0 %v2543_v28 }
 0x578   :  { %2533 = vmatprep.subr.bf16.mxu1 %v3028_v0 }
 0x57a   :  { %2400 = vmatmul.mubr.msk.f32.vlgmr.msra.gmra.mrb[18].mxu1 %vm381_vm1, %v3713_v61  ;;  %2433 = vmatmul.mubr.msk.f32.vlgmr.msra.gmra.mrb[12].mxu0 %vm381_vm1, %v3713_v61 }
 0x57b   :  { %2421 = vmatprep.mubr.msk.f32.mxu1 %vm3029_vm0, %v3030_v1  ;;  %2535 = vmatpush3.bf16.msra.mxu1 %v2534_v23 }
 0x57c   :  { %2536 = vmatprep.subr.bf16.mxu1 %v3028_v0 }
 0x57f   :  { %2538 = vmatpush3.bf16.msra.mxu1 %v2537_v33 }
 0x62d   :  { %v1192_v16 = vpop.f32.mrb[10].mxu1  ;;  %v1432_v34 = vpop.f32.mrb[4].mxu0 }
 0x62e   :  { %v1266_v15 = vadd.f32 %v3746_v31, %v1192_v16  ;;  %v2313_v55 = vpop.f32.mrb[11].mxu1  ;;  %v2346_v17 = vpop.f32.mrb[5].mxu0 }
 0x635   :  { %v1339_v61 = vpop.f32.mrb[12].mxu1  ;;  %v1576_v37 = vpop.f32.mrb[6].mxu0 }
 0x636   :  { %v1343_v1 = vadd.f32 %v1339_v61, %v1266_v15  ;;  %v2335_v5 = vpop.f32.mrb[13].mxu1  ;;  %v2368_v53 = vpop.f32.mrb[7].mxu0 }
 0x638   :  { %v1351_v40 = vadd.f32 %v2127_v57, %v1343_v1 }
 0x63a   :  { %v2128_v41 = vmul.f32 -1.442695, %v1351_v40 }
 0x63c   :  { %2606 = vpow2.f32 %v2128_v41 }
 0x63d   :  { %v1502_v18 = vpop.f32.mrb[14].mxu1  ;;  %v1750_v43 = vpop.f32.mrb[8].mxu0 }
 0x63e   :  { %v1503_v46 = vadd.f32 %v1502_v18, %v1432_v34  ;;  %v2357_v0 = vpop.f32.mrb[15].mxu1  ;;  %v2390_v47 = vpop.f32.mrb[9].mxu0 }
 0x640   :  { %v1580_v49 = vadd.f32 %v1576_v37, %v1503_v46 }
 0x642   :  { %v1588_v50 = vadd.f32 %v2132_v48, %v1580_v49 }
 0x644   :  { %v2133_v31 = vmul.f32 -1.442695, %v1588_v50 }
 0x645   :  { %v1913_v35 = vpop.f32.mrb[10].mxu0  ;;  %v1672_v19 = vpop.f32.mrb[16].mxu1 }
 0x646   :  { %v2607_v36 = vpop.eup %2606  ;;  %2608 = vpow2.f32 %v2133_v31  ;;  %v2412_v59 = vpop.f32.mrb[11].mxu0  ;;  %v1673_v13 = vadd.f32 %v2134_v44, %v1672_v19 }
 0x647   :  { %v2379_v38 = vpop.f32.mrb[17].mxu1  ;;  %v1355_v60 = vadd.f32 1.0, %v2607_v36 }
 0x649   :  { %2610 = vrcp.f32 %v1355_v60 }
 0x64d   :  { %v1820_v39 = vpop.f32.mrb[18].mxu1  ;;  %v2060_v62 = vpop.f32.mrb[12].mxu0 }
 0x64e   :  { %v1821_v42 = vadd.f32 %v1820_v39, %v1750_v43  ;;  %v2401_v20 = vpop.f32.mrb[19].mxu1  ;;  %v2434_v9 = vpop.f32.mrb[13].mxu0 }
 0x650   :  { %v2609_v51 = vpop.eup %2608  ;;  %v1831_v8 = vadd.f32 %v2138_v25, %v1821_v42 }
 0x651   :  { %v1592_v52 = vadd.f32 1.0, %v2609_v51 }
 0x653   :  { %v2611_v58 = vpop.eup %2610  ;;  %2612 = vrcp.f32 %v1592_v52 }
 0x654   :  { %v1832_v63 = vmul.f32 %v2611_v58, %v1673_v13 }
 0x656   :  { %v1833_v2 = vadd.f32 %v1832_v63, %v1831_v8 }
 0x658   :  { %2614 = vtanh.f32 %v1833_v2 }
 0x65d   :  { %v2613_v21 = vpop.eup %2612 }
 0x65e   :  { %v1835_v3 = vsub.f32 1.0, %v2613_v21  ;;  %v1837_v27 = vmul.f32 %v3847_v22, %v2613_v21 }
 0x662   :  { %v2615_v54 = vpop.eup %2614 }
 0x663   :  { %v1836_v4 = vmul.f32 %v2615_v54, %v1835_v3 }
 0x665   :  { %v1838_v45 = vadd.f32 %v1837_v27, %v1836_v4 }
 0x667   :  { %2422 = vmatmul.mubr.msk.f32.vlgmr.msra.gmra.mrb[20].mxu1 %vm381_vm1, %v1838_v45  ;;  %2074 = vst.msk [vmem:[#allocation27] sm:$0xff] %vm381_vm1, %v1838_v45 }
 0x668   :  { %2958 = shalt.err (!%p2955_p12)
}
 0x669   :  { %s2959_s16 = scalar_lea.hbm %s3922_s26, 128 }
 0x66a   :  { %p2960_p13 = scmp.ne.s32.totalorder %s3922_s26, %s2959_s16  ;;  %p2963_p0 = scmp.lt.u32.totalorder %s2959_s16, %s3922_s26 }
 0x66c   :  { %p2965_p1 = pnand %p2963_p0, %p2960_p13 }
 0x66e   :  { %2968 = shalt.err (!%p2965_p1)
}
 0x66f   :  { %2094 = dma.vmem_to_hbm [thread:$0]  %s2092_s2, 128, %s3922_s26, [#allocation28]  }
 0x670   :  { %s3958_s5 = sld [smem:[#allocation50_spill]]  ;;  %s3035_s6 = smov [#allocation26]  }
 0x671   :  { %s2081_s15 = sshll.u32 %s3035_s6, 4  ;;  %s2082_s15 = int_to_ptr.vmem [resolvable:$true] %s2081_s15 }
 0x672   :  { %s2969_s19 = scalar_lea.vmem %s2082_s15, 128  ;;  %p2974_p3 = scmp.lt.s32.totalorder %s2082_s15, %s2082_s15 }
 0x673   :  { %p2970_p2 = scmp.ne.s32.totalorder %s2082_s15, %s2969_s19  ;;  %p2975_p4 = scmp.lt.s32.totalorder %s2969_s19, %s2969_s19 }
 0x675   :  { %p2976_p5 = por %p2975_p4, %p2974_p3 }
 0x676   :  { %v2142_v10 = vld [vmem:[%s3958_s5] ss:$0 sm:$0xff] }
 0x677   :  { %p2977_p6 = pnand %p2976_p5, %p2970_p2 }
 0x73a   :  { %v1986_v11 = vpop.f32.mrb[20].mxu1 }
 0x73b   :  { %v1987_v6 = vadd.f32 %v1986_v11, %v1913_v35  ;;  %v2423_v7 = vpop.f32.mrb[21].mxu1 }
 0x73d   :  { %v2064_v12 = vadd.f32 %v2060_v62, %v1987_v6 }
 0x73f   :  { %v2072_v14 = vadd.f32 %v2142_v10, %v2064_v12 }
 0x741   :  { %2073 = vst [vmem:[#allocation26] sm:$0xff] %v2072_v14 }
 0x742   :  { %2980 = shalt.err (!%p2977_p6)
}
 0x743   :  { %s3959_s4 = sld [smem:[#allocation51_spill]] }
 0x749   :  { %s2981_s1 = scalar_lea.hbm %s3959_s4, 128 }
 0x74a   :  { %p2982_p7 = scmp.ne.s32.totalorder %s3959_s4, %s2981_s1  ;;  %p2985_p8 = scmp.lt.u32.totalorder %s2981_s1, %s3959_s4 }
 0x74c   :  { %p2987_p9 = pnand %p2985_p8, %p2982_p7 }
 0x74e   :  { %2990 = shalt.err (!%p2987_p9)
}
 0x74f   :  { %2084 = dma.vmem_to_hbm [thread:$0]  %s2082_s15, 128, %s3959_s4, [#allocation4]  }
 0x750   :  { %3007 = dma.done.wait [#allocation4], 128  }
 0x751   :  { %3008 = vsyncadd [#allocation4], 4294967168 }
 0x752   :  { %3009 = dma.done.wait [#allocation28], 128  }
 0x753   :  { %3010 = vsyncadd [#allocation28], 4294967168 }
 0x754   :  { %2101 = vsyncpa [#allocation3], 1 }
 0x755   :  { %2102 = vsyncpa [#allocation6], 1 }
 0x756   :  { %2103 = vsyncpa [#allocation9], 1 }
 0x757   :  { %2104 = vsyncpa [#allocation12], 1 }
 0x758   :  { %2105 = vsyncpa [#allocation15], 1 }
 0x759   :  { %2106 = vsyncpa [#allocation18], 1 }
 0x75a   :  { %2107 = vsyncpa [#allocation21], 1 }
 0x75b   :  { %2108 = vsyncpa [#allocation24], 1 }
 0x75c   :  { %2109 = vsyncpa [#allocation4], 1 }
 0x75d   :  { %2110 = vsyncpa [#allocation28], 1 }

</bundles_post_ra>
